<compile_context>
chip_gen: v7x
topology: tpu7x:2x2x1
jax: 0.10.0
libtpu: 0.0.40
codegen_flags: <defaults>
</compile_context>

<pallas_src>
import functools

import jax
import jax.numpy as jnp
from jax.experimental import pallas as pl
from jax.experimental.pallas import tpu as pltpu


def _round_up(x, m):
    return ((x + m - 1) // m) * m


def _pick_tile_rows(rows):
    """Row-tile size.

    Small batches: one 16-aligned tile (bf16 sublane packing), clamped to
    >=128 rows so MXU pushes stay dense.  Larger batches: aim for >=4 grid
    steps (>=2 per TensorCore once the row grid is sharded across v7x's two
    TCs); tiles are capped at 2048 rows, which amortizes the ~0.35us per-step
    overhead and per-layer MXU weight loads while keeping per-tile VMEM at a
    few MiB (safe on v7x's 64 MiB VMEM).
    """
    if rows <= 256:
        return max(128, _round_up(rows, 16))
    tile = _round_up(pl.cdiv(rows, 4), 128)
    return min(max(tile, 256), 2048)


def _vae_kernel(
    xin_ref,                                                   # packed [x | eps]
    w1_ref, b1_ref, w2_ref, b2_ref, w3_ref, b3_ref,            # encoder
    wh_ref, bh_ref,                                            # lane-placed mu|logvar head
    dw1_ref, db1_ref, dw2_ref, db2_ref,                        # decoder
    dw3_ref, db3_ref, dw4_ref, db4_ref,                        # (dw4/db4 lane-placed)
    out_ref,                                                   # packed [dec | mu | logvar | 0]
    *, latent_dim, input_size,
):
    xin = xin_ref[...]
    x = xin[:, :input_size].astype(jnp.bfloat16)
    eps = xin[:, input_size:input_size + latent_dim]

    # ---- encoder: Linear+ReLU x3 (bf16 MXU operands, f32 accumulate) ----
    h = jnp.maximum(
        jnp.dot(x, w1_ref[...], preferred_element_type=jnp.float32) + b1_ref[...], 0.0)
    h = jnp.maximum(
        jnp.dot(h.astype(jnp.bfloat16), w2_ref[...],
                preferred_element_type=jnp.float32) + b2_ref[...], 0.0)
    h = jnp.maximum(
        jnp.dot(h.astype(jnp.bfloat16), w3_ref[...],
                preferred_element_type=jnp.float32) + b3_ref[...], 0.0)

    # ---- fused, lane-placed latent heads: one matmul, nonzero columns only at
    #      [input_size : input_size + 2*latent]; slice mu / logvar for compute ----
    heads = (jnp.dot(h.astype(jnp.bfloat16), wh_ref[...],
                     preferred_element_type=jnp.float32) + bh_ref[...])
    mu = heads[:, input_size:input_size + latent_dim]
    logvar = heads[:, input_size + latent_dim:input_size + 2 * latent_dim]

    # ---- reparameterization: z = mu + eps * exp(0.5 * logvar)  (f32) ----
    z = mu + eps * jnp.exp(0.5 * logvar)

    # ---- decoder: Linear+ReLU x3, final Linear lane-placed at [0:input_size] ----
    d = jnp.maximum(
        jnp.dot(z.astype(jnp.bfloat16), dw1_ref[...],
                preferred_element_type=jnp.float32) + db1_ref[...], 0.0)
    d = jnp.maximum(
        jnp.dot(d.astype(jnp.bfloat16), dw2_ref[...],
                preferred_element_type=jnp.float32) + db2_ref[...], 0.0)
    d = jnp.maximum(
        jnp.dot(d.astype(jnp.bfloat16), dw3_ref[...],
                preferred_element_type=jnp.float32) + db3_ref[...], 0.0)
    d = (jnp.dot(d.astype(jnp.bfloat16), dw4_ref[...],
                 preferred_element_type=jnp.float32) + db4_ref[...])

    # ---- packed lane-dense store [dec | mu | logvar | 0]: one VPU add,
    #      no lane concatenation, no zeros materialization ----
    out_ref[...] = d + heads


def init_vae_params(key, input_size, latent_dim=32):
    """Deterministic parameter init. Weights stored as (in, out), f32."""
    dims = [(input_size, 256), (256, 128), (128, 64),        # encoder
            (64, latent_dim), (64, latent_dim),              # fc_mu, fc_logvar
            (latent_dim, 64), (64, 128), (128, 256), (256, input_size)]  # decoder
    params = []
    for (fan_in, fan_out) in dims:
        key, kw, kb = jax.random.split(key, 3)
        bound = 1.0 / jnp.sqrt(fan_in)
        w = jax.random.uniform(kw, (fan_in, fan_out), jnp.float32, -bound, bound)
        b = jax.random.uniform(kb, (1, fan_out), jnp.float32, -bound, bound)
        params.append((w, b))
    return params  # [enc1, enc2, enc3, mu, logvar, dec1, dec2, dec3, dec4]


def vae_forward(x, params, eps):
    """x: (batch, seq, input_size) f32; eps: (batch*seq, latent_dim) f32."""
    batch, seq, input_size = x.shape
    rows = batch * seq
    latent_dim = params[3][0].shape[1]

    # Packed lane-dense output layout: [dec | mu | logvar | 0-pad] to 128 lanes.
    out_width = input_size + 2 * latent_dim
    out_w_padded = _round_up(out_width, 128)

    (w1, b1), (w2, b2), (w3, b3) = params[0], params[1], params[2]
    (wmu, bmu), (wlv, blv) = params[3], params[4]
    (dw1, db1), (dw2, db2), (dw3, db3), (dw4, db4) = params[5:9]

    def lane_place(w, b, col_start, total_cols):
        # Zero-padded weight/bias whose live columns sit at [col_start, ...).
        wn = jnp.zeros((w.shape[0], total_cols), jnp.float32)
        wn = wn.at[:, col_start:col_start + w.shape[1]].set(w)
        bn = jnp.zeros((1, total_cols), jnp.float32)
        bn = bn.at[:, col_start:col_start + b.shape[1]].set(b)
        return wn, bn

    # Fused mu|logvar head placed at lanes [input_size : input_size+2*latent];
    # final decoder layer placed at lanes [0 : input_size].
    wh = jnp.concatenate([wmu, wlv], axis=1)
    bh = jnp.concatenate([bmu, blv], axis=1)
    wh_wide, bh_wide = lane_place(wh, bh, input_size, out_w_padded)
    dw4_wide, db4_wide = lane_place(dw4, db4, 0, out_w_padded)

    weights = [w1, w2, w3, wh_wide, dw1, dw2, dw3, dw4_wide]
    biases = [b1, b2, b3, bh_wide, db1, db2, db3, db4_wide]
    flat_params = []
    for w, b in zip(weights, biases):
        flat_params.append(w.astype(jnp.bfloat16))   # MXU operands: bf16 (halves DMA)
        flat_params.append(b)                        # biases stay f32

    # Pack x and eps into one lane-dense streamed input (halves input DMAs).
    xin_width = input_size + latent_dim
    xin = jnp.concatenate([x.reshape(rows, input_size), eps], axis=1)

    # Row tiling: stream rows in tiles; pad rows to a multiple of the tile.
    tile_rows = _pick_tile_rows(rows)
    rows_padded = _round_up(rows, tile_rows)
    if rows_padded != rows:
        # Padded rows have zero x AND zero eps, so the reparam term is 0*exp(.)
        # of bias-only logvar (finite); results are sliced off below.
        xin = jnp.pad(xin, ((0, rows_padded - rows), (0, 0)))

    grid = (rows_padded // tile_rows,)

    xin_spec = pl.BlockSpec((tile_rows, xin_width), lambda i: (i, 0))
    out_spec = pl.BlockSpec((tile_rows, out_w_padded), lambda i: (i, 0))
    # Constant index_map + single-buffered: weights/biases are DMA'd once and
    # stay VMEM-resident across the whole grid, with no useless second buffer.
    param_specs = [
        pl.BlockSpec(p.shape, lambda i: (0, 0), pipeline_mode=pl.Buffered(1))
        for p in flat_params
    ]

    # Right-sized VMEM limit: resident params + double-buffered I/O tiles +
    # generous per-row allowance for layer intermediates (clamped 16..40 MiB).
    param_bytes = sum(int(p.size) * p.dtype.itemsize for p in flat_params)
    io_bytes = 2 * tile_rows * (xin_width + out_w_padded) * 4
    interm_bytes = tile_rows * 10 * 1024
    vmem_limit = max(16 * 1024 * 1024,
                     min(param_bytes + io_bytes + interm_bytes, 40 * 1024 * 1024))

    kernel = functools.partial(
        _vae_kernel, latent_dim=latent_dim, input_size=input_size)

    packed = pl.pallas_call(
        kernel,
        out_shape=jax.ShapeDtypeStruct((rows_padded, out_w_padded), jnp.float32),
        grid=grid,
        in_specs=[xin_spec] + param_specs,
        out_specs=out_spec,
        compiler_params=pltpu.CompilerParams(
            dimension_semantics=("parallel",),   # shard row tiles across TCs (v7x)
            vmem_limit_bytes=int(vmem_limit),
        ),
    )(xin, *flat_params)

    dec = packed[:rows, :input_size].reshape(batch, seq, input_size)
    mu = packed[:rows, input_size:input_size + latent_dim]
    logvar = packed[:rows, input_size + latent_dim:input_size + 2 * latent_dim]
    return dec, mu, logvar


def _vae_forward_ref(x, params, eps):
    """Pure-JAX f32 reference (matches the PyTorch module)."""
    batch, seq, input_size = x.shape
    h = x.reshape(batch * seq, input_size)
    for (w, b) in params[0:3]:
        h = jnp.maximum(h @ w + b, 0.0)
    mu = h @ params[3][0] + params[3][1]
    logvar = h @ params[4][0] + params[4][1]
    z = mu + eps * jnp.exp(0.5 * logvar)
    d = z
    for (w, b) in params[5:8]:
        d = jnp.maximum(d @ w + b, 0.0)
    d = d @ params[8][0] + params[8][1]
    return d.reshape(batch, seq, input_size), mu, logvar


if __name__ == "__main__":
    key = jax.random.PRNGKey(0)
    batch, seq, input_size, latent_dim = 2, 8, 32, 32

    k_params, k_x, k_eps = jax.random.split(key, 3)
    params = init_vae_params(k_params, input_size, latent_dim)
    x = jax.random.normal(k_x, (batch, seq, input_size), jnp.float32)
    # TODO(synk): eps is sampled host-side (like torch.randn_like) instead of
    # in-kernel via pltpu.prng_* to keep the forward deterministic/testable.
    eps = jax.random.normal(k_eps, (batch * seq, latent_dim), jnp.float32)

    decoded, mu, logvar = vae_forward(x, params, eps)
    jax.block_until_ready((decoded, mu, logvar))

    assert decoded.shape == (batch, seq, input_size)
    assert mu.shape == (batch * seq, latent_dim)
    assert logvar.shape == (batch * seq, latent_dim)
    assert bool(jnp.all(jnp.isfinite(decoded)))
    assert bool(jnp.all(jnp.isfinite(mu)))
    assert bool(jnp.all(jnp.isfinite(logvar)))

    # Loose tolerance vs f32 reference (kernel uses bf16 matmul operands).
    dec_r, mu_r, lv_r = _vae_forward_ref(x, params, eps)
    assert bool(jnp.allclose(mu, mu_r, rtol=5e-2, atol=5e-2))
    assert bool(jnp.allclose(logvar, lv_r, rtol=5e-2, atol=5e-2))
    assert bool(jnp.allclose(decoded, dec_r, rtol=5e-2, atol=5e-2))

    print("KERNEL_OK")
</pallas_src>

<mosaic_0001>
module attributes {stable_mosaic.version = 11 : i64} {
  func.func @_vae_kernel(%arg0: i32, %arg1: memref<128x64xf32, #tpu.memory_space<vmem>>, %arg2: memref<32x256xbf16, #tpu.memory_space<vmem>>, %arg3: memref<1x256xf32, #tpu.memory_space<vmem>>, %arg4: memref<256x128xbf16, #tpu.memory_space<vmem>>, %arg5: memref<1x128xf32, #tpu.memory_space<vmem>>, %arg6: memref<128x64xbf16, #tpu.memory_space<vmem>>, %arg7: memref<1x64xf32, #tpu.memory_space<vmem>>, %arg8: memref<64x128xbf16, #tpu.memory_space<vmem>>, %arg9: memref<1x128xf32, #tpu.memory_space<vmem>>, %arg10: memref<32x64xbf16, #tpu.memory_space<vmem>>, %arg11: memref<1x64xf32, #tpu.memory_space<vmem>>, %arg12: memref<64x128xbf16, #tpu.memory_space<vmem>>, %arg13: memref<1x128xf32, #tpu.memory_space<vmem>>, %arg14: memref<128x256xbf16, #tpu.memory_space<vmem>>, %arg15: memref<1x256xf32, #tpu.memory_space<vmem>>, %arg16: memref<256x128xbf16, #tpu.memory_space<vmem>>, %arg17: memref<1x128xf32, #tpu.memory_space<vmem>>, %arg18: memref<128x128xf32, #tpu.memory_space<vmem>>) attributes {dimension_semantics = [#tpu.dimension_semantics<parallel>], iteration_bounds = array<i64: 1>, scalar_prefetch = 0 : i64, scratch_operands = 0 : i64, tpu.core_type = #tpu.core_type<tc>, window_params = [{transform_indices = @transform_0, window_bounds = array<i64: 128, 64>}, {pipeline_mode = #tpu.pipeline_mode<synchronous>, transform_indices = @transform_1, window_bounds = array<i64: 32, 256>}, {pipeline_mode = #tpu.pipeline_mode<synchronous>, transform_indices = @transform_2, window_bounds = array<i64: 1, 256>}, {pipeline_mode = #tpu.pipeline_mode<synchronous>, transform_indices = @transform_3, window_bounds = array<i64: 256, 128>}, {pipeline_mode = #tpu.pipeline_mode<synchronous>, transform_indices = @transform_4, window_bounds = array<i64: 1, 128>}, {pipeline_mode = #tpu.pipeline_mode<synchronous>, transform_indices = @transform_5, window_bounds = array<i64: 128, 64>}, {pipeline_mode = #tpu.pipeline_mode<synchronous>, transform_indices = @transform_6, window_bounds = array<i64: 1, 64>}, {pipeline_mode = #tpu.pipeline_mode<synchronous>, transform_indices = @transform_7, window_bounds = array<i64: 64, 128>}, {pipeline_mode = #tpu.pipeline_mode<synchronous>, transform_indices = @transform_8, window_bounds = array<i64: 1, 128>}, {pipeline_mode = #tpu.pipeline_mode<synchronous>, transform_indices = @transform_9, window_bounds = array<i64: 32, 64>}, {pipeline_mode = #tpu.pipeline_mode<synchronous>, transform_indices = @transform_10, window_bounds = array<i64: 1, 64>}, {pipeline_mode = #tpu.pipeline_mode<synchronous>, transform_indices = @transform_11, window_bounds = array<i64: 64, 128>}, {pipeline_mode = #tpu.pipeline_mode<synchronous>, transform_indices = @transform_12, window_bounds = array<i64: 1, 128>}, {pipeline_mode = #tpu.pipeline_mode<synchronous>, transform_indices = @transform_13, window_bounds = array<i64: 128, 256>}, {pipeline_mode = #tpu.pipeline_mode<synchronous>, transform_indices = @transform_14, window_bounds = array<i64: 1, 256>}, {pipeline_mode = #tpu.pipeline_mode<synchronous>, transform_indices = @transform_15, window_bounds = array<i64: 256, 128>}, {pipeline_mode = #tpu.pipeline_mode<synchronous>, transform_indices = @transform_16, window_bounds = array<i64: 1, 128>}, {transform_indices = @transform_17, window_bounds = array<i64: 128, 128>}]} {
    %c0 = arith.constant 0 : index
    %c0_0 = arith.constant 0 : index
    %0 = vector.load %arg1[%c0, %c0_0] : memref<128x64xf32, #tpu.memory_space<vmem>>, vector<128x64xf32>
    %1 = vector.extract_strided_slice %0 {offsets = [0, 0], sizes = [128, 32], strides = [1, 1]} : vector<128x64xf32> to vector<128x32xf32>
    %2 = arith.truncf %1 : vector<128x32xf32> to vector<128x32xbf16>
    %3 = vector.extract_strided_slice %0 {offsets = [0, 32], sizes = [128, 32], strides = [1, 1]} : vector<128x64xf32> to vector<128x32xf32>
    %c0_1 = arith.constant 0 : index
    %c0_2 = arith.constant 0 : index
    %4 = vector.load %arg2[%c0_1, %c0_2] : memref<32x256xbf16, #tpu.memory_space<vmem>>, vector<32x256xbf16>
    %cst = arith.constant dense<0.000000e+00> : vector<128x256xf32>
    %5 = tpu.matmul %2, %4, %cst {dimension_numbers = #tpu.dot_dimension_numbers<[1], [0], [0], [1], [0, 0, 1, 1], [], []>} : vector<128x32xbf16>, vector<32x256xbf16>, vector<128x256xf32> -> vector<128x256xf32>
    %c0_3 = arith.constant 0 : index
    %c0_4 = arith.constant 0 : index
    %6 = vector.load %arg3[%c0_3, %c0_4] : memref<1x256xf32, #tpu.memory_space<vmem>>, vector<1x256xf32>
    %7 = vector.broadcast %6 : vector<1x256xf32> to vector<128x256xf32>
    %8 = arith.addf %5, %7 : vector<128x256xf32>
    %cst_5 = arith.constant 0.000000e+00 : f32
    %9 = vector.broadcast %cst_5 : f32 to vector<128x256xf32>
    %10 = arith.maximumf %8, %9 : vector<128x256xf32>
    %11 = arith.truncf %10 : vector<128x256xf32> to vector<128x256xbf16>
    %c0_6 = arith.constant 0 : index
    %c0_7 = arith.constant 0 : index
    %12 = vector.load %arg4[%c0_6, %c0_7] : memref<256x128xbf16, #tpu.memory_space<vmem>>, vector<256x128xbf16>
    %cst_8 = arith.constant dense<0.000000e+00> : vector<128x128xf32>
    %13 = tpu.matmul %11, %12, %cst_8 {dimension_numbers = #tpu.dot_dimension_numbers<[1], [0], [0], [1], [0, 0, 1, 1], [], []>} : vector<128x256xbf16>, vector<256x128xbf16>, vector<128x128xf32> -> vector<128x128xf32>
    %c0_9 = arith.constant 0 : index
    %c0_10 = arith.constant 0 : index
    %14 = vector.load %arg5[%c0_9, %c0_10] : memref<1x128xf32, #tpu.memory_space<vmem>>, vector<1x128xf32>
    %15 = vector.broadcast %14 : vector<1x128xf32> to vector<128x128xf32>
    %16 = arith.addf %13, %15 : vector<128x128xf32>
    %cst_11 = arith.constant 0.000000e+00 : f32
    %17 = vector.broadcast %cst_11 : f32 to vector<128x128xf32>
    %18 = arith.maximumf %16, %17 : vector<128x128xf32>
    %19 = arith.truncf %18 : vector<128x128xf32> to vector<128x128xbf16>
    %c0_12 = arith.constant 0 : index
    %c0_13 = arith.constant 0 : index
    %20 = vector.load %arg6[%c0_12, %c0_13] : memref<128x64xbf16, #tpu.memory_space<vmem>>, vector<128x64xbf16>
    %cst_14 = arith.constant dense<0.000000e+00> : vector<128x64xf32>
    %21 = tpu.matmul %19, %20, %cst_14 {dimension_numbers = #tpu.dot_dimension_numbers<[1], [0], [0], [1], [0, 0, 1, 1], [], []>} : vector<128x128xbf16>, vector<128x64xbf16>, vector<128x64xf32> -> vector<128x64xf32>
    %c0_15 = arith.constant 0 : index
    %c0_16 = arith.constant 0 : index
    %22 = vector.load %arg7[%c0_15, %c0_16] : memref<1x64xf32, #tpu.memory_space<vmem>>, vector<1x64xf32>
    %23 = vector.broadcast %22 : vector<1x64xf32> to vector<128x64xf32>
    %24 = arith.addf %21, %23 : vector<128x64xf32>
    %cst_17 = arith.constant 0.000000e+00 : f32
    %25 = vector.broadcast %cst_17 : f32 to vector<128x64xf32>
    %26 = arith.maximumf %24, %25 : vector<128x64xf32>
    %27 = arith.truncf %26 : vector<128x64xf32> to vector<128x64xbf16>
    %c0_18 = arith.constant 0 : index
    %c0_19 = arith.constant 0 : index
    %28 = vector.load %arg8[%c0_18, %c0_19] : memref<64x128xbf16, #tpu.memory_space<vmem>>, vector<64x128xbf16>
    %cst_20 = arith.constant dense<0.000000e+00> : vector<128x128xf32>
    %29 = tpu.matmul %27, %28, %cst_20 {dimension_numbers = #tpu.dot_dimension_numbers<[1], [0], [0], [1], [0, 0, 1, 1], [], []>} : vector<128x64xbf16>, vector<64x128xbf16>, vector<128x128xf32> -> vector<128x128xf32>
    %c0_21 = arith.constant 0 : index
    %c0_22 = arith.constant 0 : index
    %30 = vector.load %arg9[%c0_21, %c0_22] : memref<1x128xf32, #tpu.memory_space<vmem>>, vector<1x128xf32>
    %31 = vector.broadcast %30 : vector<1x128xf32> to vector<128x128xf32>
    %32 = arith.addf %29, %31 : vector<128x128xf32>
    %33 = vector.extract_strided_slice %32 {offsets = [0, 32], sizes = [128, 32], strides = [1, 1]} : vector<128x128xf32> to vector<128x32xf32>
    %34 = vector.extract_strided_slice %32 {offsets = [0, 64], sizes = [128, 32], strides = [1, 1]} : vector<128x128xf32> to vector<128x32xf32>
    %cst_23 = arith.constant 5.000000e-01 : f32
    %35 = vector.broadcast %cst_23 : f32 to vector<128x32xf32>
    %36 = arith.mulf %35, %34 : vector<128x32xf32>
    %37 = math.exp %36 : vector<128x32xf32>
    %38 = arith.mulf %3, %37 : vector<128x32xf32>
    %39 = arith.addf %33, %38 : vector<128x32xf32>
    %40 = arith.truncf %39 : vector<128x32xf32> to vector<128x32xbf16>
    %c0_24 = arith.constant 0 : index
    %c0_25 = arith.constant 0 : index
    %41 = vector.load %arg10[%c0_24, %c0_25] : memref<32x64xbf16, #tpu.memory_space<vmem>>, vector<32x64xbf16>
    %cst_26 = arith.constant dense<0.000000e+00> : vector<128x64xf32>
    %42 = tpu.matmul %40, %41, %cst_26 {dimension_numbers = #tpu.dot_dimension_numbers<[1], [0], [0], [1], [0, 0, 1, 1], [], []>} : vector<128x32xbf16>, vector<32x64xbf16>, vector<128x64xf32> -> vector<128x64xf32>
    %c0_27 = arith.constant 0 : index
    %c0_28 = arith.constant 0 : index
    %43 = vector.load %arg11[%c0_27, %c0_28] : memref<1x64xf32, #tpu.memory_space<vmem>>, vector<1x64xf32>
    %44 = vector.broadcast %43 : vector<1x64xf32> to vector<128x64xf32>
    %45 = arith.addf %42, %44 : vector<128x64xf32>
    %cst_29 = arith.constant 0.000000e+00 : f32
    %46 = vector.broadcast %cst_29 : f32 to vector<128x64xf32>
    %47 = arith.maximumf %45, %46 : vector<128x64xf32>
    %48 = arith.truncf %47 : vector<128x64xf32> to vector<128x64xbf16>
    %c0_30 = arith.constant 0 : index
    %c0_31 = arith.constant 0 : index
    %49 = vector.load %arg12[%c0_30, %c0_31] : memref<64x128xbf16, #tpu.memory_space<vmem>>, vector<64x128xbf16>
    %cst_32 = arith.constant dense<0.000000e+00> : vector<128x128xf32>
    %50 = tpu.matmul %48, %49, %cst_32 {dimension_numbers = #tpu.dot_dimension_numbers<[1], [0], [0], [1], [0, 0, 1, 1], [], []>} : vector<128x64xbf16>, vector<64x128xbf16>, vector<128x128xf32> -> vector<128x128xf32>
    %c0_33 = arith.constant 0 : index
    %c0_34 = arith.constant 0 : index
    %51 = vector.load %arg13[%c0_33, %c0_34] : memref<1x128xf32, #tpu.memory_space<vmem>>, vector<1x128xf32>
    %52 = vector.broadcast %51 : vector<1x128xf32> to vector<128x128xf32>
    %53 = arith.addf %50, %52 : vector<128x128xf32>
    %cst_35 = arith.constant 0.000000e+00 : f32
    %54 = vector.broadcast %cst_35 : f32 to vector<128x128xf32>
    %55 = arith.maximumf %53, %54 : vector<128x128xf32>
    %56 = arith.truncf %55 : vector<128x128xf32> to vector<128x128xbf16>
    %c0_36 = arith.constant 0 : index
    %c0_37 = arith.constant 0 : index
    %57 = vector.load %arg14[%c0_36, %c0_37] : memref<128x256xbf16, #tpu.memory_space<vmem>>, vector<128x256xbf16>
    %cst_38 = arith.constant dense<0.000000e+00> : vector<128x256xf32>
    %58 = tpu.matmul %56, %57, %cst_38 {dimension_numbers = #tpu.dot_dimension_numbers<[1], [0], [0], [1], [0, 0, 1, 1], [], []>} : vector<128x128xbf16>, vector<128x256xbf16>, vector<128x256xf32> -> vector<128x256xf32>
    %c0_39 = arith.constant 0 : index
    %c0_40 = arith.constant 0 : index
    %59 = vector.load %arg15[%c0_39, %c0_40] : memref<1x256xf32, #tpu.memory_space<vmem>>, vector<1x256xf32>
    %60 = vector.broadcast %59 : vector<1x256xf32> to vector<128x256xf32>
    %61 = arith.addf %58, %60 : vector<128x256xf32>
    %cst_41 = arith.constant 0.000000e+00 : f32
    %62 = vector.broadcast %cst_41 : f32 to vector<128x256xf32>
    %63 = arith.maximumf %61, %62 : vector<128x256xf32>
    %64 = arith.truncf %63 : vector<128x256xf32> to vector<128x256xbf16>
    %c0_42 = arith.constant 0 : index
    %c0_43 = arith.constant 0 : index
    %65 = vector.load %arg16[%c0_42, %c0_43] : memref<256x128xbf16, #tpu.memory_space<vmem>>, vector<256x128xbf16>
    %cst_44 = arith.constant dense<0.000000e+00> : vector<128x128xf32>
    %66 = tpu.matmul %64, %65, %cst_44 {dimension_numbers = #tpu.dot_dimension_numbers<[1], [0], [0], [1], [0, 0, 1, 1], [], []>} : vector<128x256xbf16>, vector<256x128xbf16>, vector<128x128xf32> -> vector<128x128xf32>
    %c0_45 = arith.constant 0 : index
    %c0_46 = arith.constant 0 : index
    %67 = vector.load %arg17[%c0_45, %c0_46] : memref<1x128xf32, #tpu.memory_space<vmem>>, vector<1x128xf32>
    %68 = vector.broadcast %67 : vector<1x128xf32> to vector<128x128xf32>
    %69 = arith.addf %66, %68 : vector<128x128xf32>
    %70 = arith.addf %69, %32 : vector<128x128xf32>
    %c0_47 = arith.constant 0 : index
    %c0_48 = arith.constant 0 : index
    %71 = vector.load %arg18[%c0_47, %c0_48] : memref<128x128xf32, #tpu.memory_space<vmem>>, vector<128x128xf32>
    tpu.vector_store %arg18[%c0_47, %c0_48], %70 {strides = array<i32>} : memref<128x128xf32, #tpu.memory_space<vmem>>, vector<128x128xf32>,
    return
  }
  func.func @transform_0(%arg0: i32) -> (i32, i32) {
    %c0_i32 = arith.constant 0 : i32
    %c0_i32_0 = arith.constant 0 : i32
    return %arg0, %c0_i32 : i32, i32
  }
  func.func @transform_1(%arg0: i32) -> (i32, i32) {
    %c0_i32 = arith.constant 0 : i32
    %c0_i32_0 = arith.constant 0 : i32
    %c0_i32_1 = arith.constant 0 : i32
    return %c0_i32, %c0_i32_0 : i32, i32
  }
  func.func @transform_2(%arg0: i32) -> (i32, i32) {
    %c0_i32 = arith.constant 0 : i32
    %c0_i32_0 = arith.constant 0 : i32
    %c0_i32_1 = arith.constant 0 : i32
    return %c0_i32, %c0_i32_0 : i32, i32
  }
  func.func @transform_3(%arg0: i32) -> (i32, i32) {
    %c0_i32 = arith.constant 0 : i32
    %c0_i32_0 = arith.constant 0 : i32
    %c0_i32_1 = arith.constant 0 : i32
    return %c0_i32, %c0_i32_0 : i32, i32
  }
  func.func @transform_4(%arg0: i32) -> (i32, i32) {
    %c0_i32 = arith.constant 0 : i32
    %c0_i32_0 = arith.constant 0 : i32
    %c0_i32_1 = arith.constant 0 : i32
    return %c0_i32, %c0_i32_0 : i32, i32
  }
  func.func @transform_5(%arg0: i32) -> (i32, i32) {
    %c0_i32 = arith.constant 0 : i32
    %c0_i32_0 = arith.constant 0 : i32
    %c0_i32_1 = arith.constant 0 : i32
    return %c0_i32, %c0_i32_0 : i32, i32
  }
  func.func @transform_6(%arg0: i32) -> (i32, i32) {
    %c0_i32 = arith.constant 0 : i32
    %c0_i32_0 = arith.constant 0 : i32
    %c0_i32_1 = arith.constant 0 : i32
    return %c0_i32, %c0_i32_0 : i32, i32
  }
  func.func @transform_7(%arg0: i32) -> (i32, i32) {
    %c0_i32 = arith.constant 0 : i32
    %c0_i32_0 = arith.constant 0 : i32
    %c0_i32_1 = arith.constant 0 : i32
    return %c0_i32, %c0_i32_0 : i32, i32
  }
  func.func @transform_8(%arg0: i32) -> (i32, i32) {
    %c0_i32 = arith.constant 0 : i32
    %c0_i32_0 = arith.constant 0 : i32
    %c0_i32_1 = arith.constant 0 : i32
    return %c0_i32, %c0_i32_0 : i32, i32
  }
  func.func @transform_9(%arg0: i32) -> (i32, i32) {
    %c0_i32 = arith.constant 0 : i32
    %c0_i32_0 = arith.constant 0 : i32
    %c0_i32_1 = arith.constant 0 : i32
    return %c0_i32, %c0_i32_0 : i32, i32
  }
  func.func @transform_10(%arg0: i32) -> (i32, i32) {
    %c0_i32 = arith.constant 0 : i32
    %c0_i32_0 = arith.constant 0 : i32
    %c0_i32_1 = arith.constant 0 : i32
    return %c0_i32, %c0_i32_0 : i32, i32
  }
  func.func @transform_11(%arg0: i32) -> (i32, i32) {
    %c0_i32 = arith.constant 0 : i32
    %c0_i32_0 = arith.constant 0 : i32
    %c0_i32_1 = arith.constant 0 : i32
    return %c0_i32, %c0_i32_0 : i32, i32
  }
  func.func @transform_12(%arg0: i32) -> (i32, i32) {
    %c0_i32 = arith.constant 0 : i32
    %c0_i32_0 = arith.constant 0 : i32
    %c0_i32_1 = arith.constant 0 : i32
    return %c0_i32, %c0_i32_0 : i32, i32
  }
  func.func @transform_13(%arg0: i32) -> (i32, i32) {
    %c0_i32 = arith.constant 0 : i32
    %c0_i32_0 = arith.constant 0 : i32
    %c0_i32_1 = arith.constant 0 : i32
    return %c0_i32, %c0_i32_0 : i32, i32
  }
  func.func @transform_14(%arg0: i32) -> (i32, i32) {
    %c0_i32 = arith.constant 0 : i32
    %c0_i32_0 = arith.constant 0 : i32
    %c0_i32_1 = arith.constant 0 : i32
    return %c0_i32, %c0_i32_0 : i32, i32
  }
  func.func @transform_15(%arg0: i32) -> (i32, i32) {
    %c0_i32 = arith.constant 0 : i32
    %c0_i32_0 = arith.constant 0 : i32
    %c0_i32_1 = arith.constant 0 : i32
    return %c0_i32, %c0_i32_0 : i32, i32
  }
  func.func @transform_16(%arg0: i32) -> (i32, i32) {
    %c0_i32 = arith.constant 0 : i32
    %c0_i32_0 = arith.constant 0 : i32
    %c0_i32_1 = arith.constant 0 : i32
    return %c0_i32, %c0_i32_0 : i32, i32
  }
  func.func @transform_17(%arg0: i32) -> (i32, i32) {
    %c0_i32 = arith.constant 0 : i32
    %c0_i32_0 = arith.constant 0 : i32
    return %arg0, %c0_i32 : i32, i32
  }
}

</mosaic_0001>

<bundles_post_ra>
// kernel: tpu_custom_call.1
= control target key start
LH: loop header
LB: loop body
LE: loop exit
PB: predicated region body
PF: predicated region fallthrough
CT: control target
= control target key end

     0   :  { %s3524_s0 = inlined_call_operand.vmem [shape: f32[128,64], index: 0, kind: input, shape index: {}]   ;;  %s3525_s1 = inlined_call_operand.vmem [shape: bf16[32,256], index: 1, kind: input, shape index: {}]   ;;  %s3526_s2 = inlined_call_operand.vmem [shape: f32[1,256], index: 2, kind: input, shape index: {}]   ;;  %s3527_s3 = inlined_call_operand.vmem [shape: bf16[256,128], index: 3, kind: input, shape index: {}]   ;;  %s3528_s4 = inlined_call_operand.hbm [shape: f32[1,128], index: 4, kind: input, shape index: {}]   ;;  %s3529_s5 = inlined_call_operand.vmem [shape: bf16[128,64], index: 5, kind: input, shape index: {}]   ;;  %s3530_s6 = inlined_call_operand.hbm [shape: f32[1,64], index: 6, kind: input, shape index: {}]   ;;  %s3531_s7 = inlined_call_operand.hbm [shape: bf16[64,128], index: 7, kind: input, shape index: {}]   ;;  %s3532_s8 = inlined_call_operand.hbm [shape: f32[1,128], index: 8, kind: input, shape index: {}]   ;;  %s3533_s9 = inlined_call_operand.hbm [shape: bf16[32,64], index: 9, kind: input, shape index: {}]   ;;  %s3534_s10 = inlined_call_operand.vmem [shape: f32[1,64], index: 10, kind: input, shape index: {}]   ;;  %s3535_s11 = inlined_call_operand.vmem [shape: bf16[64,128], index: 11, kind: input, shape index: {}]   ;;  %s3536_s12 = inlined_call_operand.vmem [shape: f32[1,128], index: 12, kind: input, shape index: {}]   ;;  %s3537_s13 = inlined_call_operand.vmem [shape: bf16[128,256], index: 13, kind: input, shape index: {}]   ;;  %s3538_s14 = inlined_call_operand.vmem [shape: f32[1,256], index: 14, kind: input, shape index: {}]   ;;  %s3539_s15 = inlined_call_operand.hbm [shape: bf16[256,128], index: 15, kind: input, shape index: {}]   ;;  %s3540_s16 = inlined_call_operand.vmem [shape: f32[1,128], index: 16, kind: input, shape index: {}]   ;;  %s3541_s17 = inlined_call_operand.hbm [shape: f32[128,128], index: 17, kind: output, shape index: {}]  }
   0x1   :  { %3544 = sst [smem:[#allocation19_spill]] %s3524_s0 }
   0x2   :  { %3545 = sst [smem:[#allocation20_spill]] %s3525_s1 }
   0x3   :  { %22 = vsyncpa [#allocation3], 0 }
   0x4   :  { %23 = vsyncpa [#allocation6], 0 }
   0x5   :  { %24 = vsyncpa [#allocation9], 0 }
   0x6   :  { %25 = vsyncpa [#allocation12], 0 }
   0x7   :  { %26 = vsyncpa [#allocation4], 0  ;;  %s2769_s24 = smov [#allocation5]   ;;  %s2770_s26 = smov [#allocation8]  }
   0x8   :  { %s53_s25 = sshll.u32 %s2769_s24, 4  ;;  %s75_s27 = sshll.u32 %s2770_s26, 4  ;;  %s54_s25 = int_to_ptr.vmem [resolvable:$true] %s53_s25  ;;  %s76_s27 = int_to_ptr.vmem [resolvable:$true] %s75_s27 }
   0x9   :  { %s2605_s0 = scalar_lea.hbm %s3530_s6, 16 }
   0xa   :  { %p2606_p0 = scmp.ne.s32.totalorder %s3530_s6, %s2605_s0  ;;  %p2609_p1 = scmp.lt.u32.totalorder %s2605_s0, %s3530_s6 }
   0xc   :  { %p2611_p2 = pnand %p2609_p1, %p2606_p0 }
   0xe   :  { %2614 = shalt.err (!%p2611_p2)
}
   0xf   :  { %s2615_s20 = scalar_lea.vmem %s54_s25, 16  ;;  %s2619_s21 = scalar_lea.vmem %s54_s25, 32 }
  0x10   :  { %p2616_p3 = scmp.ne.s32.totalorder %s54_s25, %s2615_s20  ;;  %p2620_p4 = scmp.lt.s32.totalorder %s54_s25, %s54_s25 }
  0x11   :  { %p2621_p5 = scmp.lt.s32.totalorder %s2619_s21, %s2615_s20 }
  0x13   :  { %p2622_p6 = por %p2621_p5, %p2620_p4 }
  0x15   :  { %p2623_p7 = pnand %p2622_p6, %p2616_p3 }
  0x17   :  { %2626 = shalt.err (!%p2623_p7)
}
  0x18   :  { %56 = dma.hbm_to_vmem [thread:$0]  %s3530_s6, 16, %s54_s25, [#allocation6]  }
  0x19   :  { %s2627_s28 = scalar_lea.hbm %s3532_s8, 16 }
  0x1a   :  { %p2628_p8 = scmp.ne.s32.totalorder %s3532_s8, %s2627_s28  ;;  %p2631_p9 = scmp.lt.u32.totalorder %s2627_s28, %s3532_s8 }
  0x1c   :  { %p2633_p10 = pnand %p2631_p9, %p2628_p8 }
  0x1e   :  { %2636 = shalt.err (!%p2633_p10)
}
  0x1f   :  { %s2637_s19 = scalar_lea.vmem %s76_s27, 16  ;;  %s2641_s1 = scalar_lea.vmem %s76_s27, 32 }
  0x20   :  { %p2638_p11 = scmp.ne.s32.totalorder %s76_s27, %s2637_s19  ;;  %p2642_p12 = scmp.lt.s32.totalorder %s76_s27, %s76_s27 }
  0x21   :  { %p2643_p13 = scmp.lt.s32.totalorder %s2641_s1, %s2637_s19 }
  0x23   :  { %p2644_p0 = por %p2643_p13, %p2642_p12 }
  0x25   :  { %p2645_p1 = pnand %p2644_p0, %p2638_p11 }
  0x27   :  { %2648 = shalt.err (!%p2645_p1)
}
  0x28   :  { %78 = dma.hbm_to_vmem [thread:$0]  %s3532_s8, 16, %s76_s27, [#allocation9]  }
  0x29   :  { %s2771_s20 = smov [#allocation2]   ;;  %s2772_s22 = smov [#allocation7]  }
  0x2a   :  { %s41_s21 = sshll.u32 %s2771_s20, 4  ;;  %s62_s23 = sshll.u32 %s2772_s22, 4  ;;  %s42_s21 = int_to_ptr.vmem [resolvable:$true] %s41_s21  ;;  %s2896_s23 = int_to_ptr.vmem [resolvable:$true] %s62_s23 }
  0x2b   :  { %s2649_s28 = scalar_lea.hbm %s3528_s4, 16 }
  0x2c   :  { %p2650_p2 = scmp.ne.s32.totalorder %s3528_s4, %s2649_s28  ;;  %p2653_p3 = scmp.lt.u32.totalorder %s2649_s28, %s3528_s4 }
  0x2e   :  { %p2655_p4 = pnand %p2653_p3, %p2650_p2 }
  0x30   :  { %2658 = shalt.err (!%p2655_p4)
}
  0x31   :  { %s2659_s8 = scalar_lea.vmem %s42_s21, 16  ;;  %s2663_s27 = scalar_lea.vmem %s42_s21, 32 }
  0x32   :  { %p2660_p5 = scmp.ne.s32.totalorder %s42_s21, %s2659_s8  ;;  %p2664_p6 = scmp.lt.s32.totalorder %s42_s21, %s42_s21 }
  0x33   :  { %p2665_p7 = scmp.lt.s32.totalorder %s2663_s27, %s2659_s8 }
  0x35   :  { %p2666_p8 = por %p2665_p7, %p2664_p6 }
  0x37   :  { %p2667_p9 = pnand %p2666_p8, %p2660_p5 }
  0x39   :  { %2670 = shalt.err (!%p2667_p9)
}
  0x3a   :  { %44 = dma.hbm_to_vmem [thread:$0]  %s3528_s4, 16, %s42_s21, [#allocation3]  }
  0x3b   :  { %s2671_s20 = scalar_lea.hbm %s3531_s7, 512 }
  0x3c   :  { %p2672_p10 = scmp.ne.s32.totalorder %s3531_s7, %s2671_s20  ;;  %p2675_p11 = scmp.lt.u32.totalorder %s2671_s20, %s3531_s7 }
  0x3e   :  { %p2677_p12 = pnand %p2675_p11, %p2672_p10 }
  0x40   :  { %2680 = shalt.err (!%p2677_p12)
}
  0x41   :  { %s2681_s29 = scalar_lea.vmem %s2896_s23, 512  ;;  %p2686_p0 = scmp.lt.s32.totalorder %s2896_s23, %s2896_s23 }
  0x42   :  { %p2682_p13 = scmp.ne.s32.totalorder %s2896_s23, %s2681_s29  ;;  %p2687_p1 = scmp.lt.s32.totalorder %s2681_s29, %s2681_s29 }
  0x44   :  { %p2688_p2 = por %p2687_p1, %p2686_p0 }
  0x46   :  { %p2689_p3 = pnand %p2688_p2, %p2682_p13 }
  0x48   :  { %2692 = shalt.err (!%p2689_p3)
}
  0x49   :  { %s2773_s4 = smov 64   ;;  %s2774_s21 = smov 4  }
  0x4a   :  { %68 = dma.hbm_to_vmem [thread:$0]  %s3531_s7, 512, %s2896_s23, [#allocation6], %s2773_s4, %s2773_s4, %s2774_s21  }
  0x4b   :  { %s2775_s18 = smov [#allocation10]   ;;  %s2776_s27 = smov [#allocation11]  }
  0x4c   :  { %s84_s8 = sshll.u32 %s2775_s18, 4  ;;  %s106_s19 = sshll.u32 %s2776_s27, 4  ;;  %s85_s8 = int_to_ptr.vmem [resolvable:$true] %s84_s8  ;;  %s2930_s19 = int_to_ptr.vmem [resolvable:$true] %s106_s19 }
  0x4d   :  { %s2693_s25 = scalar_lea.hbm %s3533_s9, 256 }
  0x4e   :  { %p2694_p4 = scmp.ne.s32.totalorder %s3533_s9, %s2693_s25  ;;  %p2697_p5 = scmp.lt.u32.totalorder %s2693_s25, %s3533_s9 }
  0x50   :  { %p2699_p6 = pnand %p2697_p5, %p2694_p4 }
  0x52   :  { %2702 = shalt.err (!%p2699_p6)
}
  0x53   :  { %s2703_s7 = scalar_lea.vmem %s85_s8, 256  ;;  %p2708_p8 = scmp.lt.s32.totalorder %s85_s8, %s85_s8 }
  0x54   :  { %p2704_p7 = scmp.ne.s32.totalorder %s85_s8, %s2703_s7  ;;  %p2709_p9 = scmp.lt.s32.totalorder %s2703_s7, %s2703_s7 }
  0x56   :  { %p2710_p10 = por %p2709_p9, %p2708_p8 }
  0x58   :  { %p2711_p11 = pnand %p2710_p10, %p2704_p7 }
  0x5a   :  { %2714 = shalt.err (!%p2711_p11)
}
  0x5b   :  { %90 = dma.hbm_to_vmem [thread:$0]  %s3533_s9, 256, %s85_s8, [#allocation9], %s2773_s4, %s2773_s4, %s2774_s21  }
  0x5c   :  { %s2715_s30 = scalar_lea.hbm %s3539_s15, 2048 }
  0x5d   :  { %p2716_p12 = scmp.ne.s32.totalorder %s3539_s15, %s2715_s30  ;;  %p2719_p13 = scmp.lt.u32.totalorder %s2715_s30, %s3539_s15 }
  0x5f   :  { %p2721_p0 = pnand %p2719_p13, %p2716_p12 }
  0x61   :  { %2724 = shalt.err (!%p2721_p0)
}
  0x62   :  { %s2725_s25 = scalar_lea.vmem %s2930_s19, 2048  ;;  %p2730_p2 = scmp.lt.s32.totalorder %s2930_s19, %s2930_s19 }
  0x63   :  { %p2726_p1 = scmp.ne.s32.totalorder %s2930_s19, %s2725_s25  ;;  %p2731_p3 = scmp.lt.s32.totalorder %s2725_s25, %s2725_s25 }
  0x65   :  { %p2732_p4 = por %p2731_p3, %p2730_p2 }
  0x67   :  { %p2733_p5 = pnand %p2732_p4, %p2726_p1 }
  0x69   :  { %2736 = shalt.err (!%p2733_p5)
}
  0x6a   :  { %112 = dma.hbm_to_vmem [thread:$0]  %s3539_s15, 2048, %s2930_s19, [#allocation12], %s2773_s4, %s2773_s4, %s2774_s21  }
  0x6b   :  { %2759 = dma.done.wait [#allocation3], 16  }
  0x6c   :  { %2760 = vsyncadd [#allocation3], 4294967280 }
  0x6d   :  { %2761 = dma.done.wait [#allocation6], 528  }
  0x6e   :  { %2762 = vsyncadd [#allocation6], 4294966768 }
  0x6f   :  { %2763 = dma.done.wait [#allocation9], 272  }
  0x70   :  { %2764 = vsyncadd [#allocation9], 4294967024 }
  0x71   :  { %2765 = dma.done.wait [#allocation12], 2048  }
  0x72   :  { %2766 = vsyncadd [#allocation12], 4294965248  ;;  %v2777_v0 = vmov 0   ;;  %s3546_s24 = sld [smem:[#allocation20_spill]]  ;;  %s3547_s29 = sld [smem:[#allocation19_spill]]  ;;  %vm194_vm0 = vcmask 261120   ;;  %v164_v51 = vlaneseq }
  0x73   :  { %251 = vmatprep.mubr.bf16.mxu0 %v2777_v0  ;;  %v2483_v8 = vld [vmem:[%s3527_s3 + $0x40] sm:$0xff]   ;;  %v2485_v12 = vld [vmem:[%s3527_s3 + $0x48] sm:$0xff]   ;;  %v2487_v14 = vld [vmem:[%s3527_s3 + $0x50] sm:$0xff]   ;;  %vm867_vm1 = vcmask 523264  }
  0x74   :  { %v2484_v11 = vld [vmem:[%s3527_s3] sm:$0xff]   ;;  %2178 = vmatprep.subr.bf16.mxu1 %v2483_v8  ;;  %v2486_v13 = vld [vmem:[%s3527_s3 + $0x8] sm:$0xff]   ;;  %v2488_v16 = vld [vmem:[%s3527_s3 + $0x10] sm:$0xff]   ;;  %v3109_v52 = vshrl.u32 %v164_v51, 7 }
  0x75   :  { %2179 = vmatpush3.bf16.msra.mxu1 %v2484_v11  ;;  %v2489_v17 = vld [vmem:[%s3527_s3 + $0x58] sm:$0xff]   ;;  %v2491_v21 = vld [vmem:[%s3527_s3 + $0x60] sm:$0xff]   ;;  %v2493_v24 = vld [vmem:[%s3527_s3 + $0x68] sm:$0xff]  }
  0x76   :  { %2180 = vmatprep.subr.bf16.mxu1 %v2485_v12  ;;  %v2490_v20 = vld [vmem:[%s3527_s3 + $0x18] sm:$0xff]   ;;  %v2492_v22 = vld [vmem:[%s3527_s3 + $0x20] sm:$0xff]   ;;  %v2494_v40 = vld [vmem:[%s3527_s3 + $0x28] sm:$0xff]   ;;  %v166_v53 = vsub.s32 0, %v3109_v52  ;;  %v170_v55 = vsub.s32 1, %v3109_v52 }
  0x77   :  { %v2495_v41 = vld [vmem:[%s3527_s3 + $0x70] sm:$0xff]   ;;  %v2497_v43 = vld [vmem:[%s3527_s3 + $0x78] sm:$0xff]   ;;  %v2499_v45 = vld [vmem:[%s3529_s5] sm:$0xff]  }
  0x78   :  { %v2477_v1 = vld [vmem:[%s3546_s24 + $0x4] ss:$8 sps:$4 sm:$0xff]   ;;  %v2479_v2 = vld [vmem:[%s3546_s24] ss:$8 sps:$4 sm:$0xff]   ;;  %v2480_v3 = vld [vmem:[%s3546_s24 + $0x14] ss:$8 sps:$4 sm:$0xff]  }
  0x79   :  { %219 = vmatprep.subr.bf16.mxu0 %v2477_v1  ;;  %v2482_v4 = vld [vmem:[%s3546_s24 + $0x10] ss:$8 sps:$4 sm:$0xff]   ;;  %v134_v5 = vld [vmem:[%s3547_s29] sm:$0xff]  ;;  %v135_v6 = vld [vmem:[%s3547_s29 + $0x8] sm:$0xff]  ;;  %2181 = vmatpush3.bf16.msra.mxu1 %v2486_v13 }
  0x7a   :  { %220 = vmatpush1.bf16.msra.mxu0 %v2479_v2  ;;  %v150_v7 = vpack.c.bf16 %v135_v6, %v134_v5  ;;  %v136_v9 = vld [vmem:[%s3547_s29 + $0x10] sm:$0xff]  ;;  %v137_v10 = vld [vmem:[%s3547_s29 + $0x18] sm:$0xff]  ;;  %2182 = vmatprep.subr.bf16.mxu1 %v2487_v14  ;;  %v138_v18 = vld [vmem:[%s3547_s29 + $0x20] sm:$0xff] }
  0x7b   :  { %221 = vmatprep.subr.bf16.mxu0 %v2480_v3  ;;  %v151_v15 = vpack.c.bf16 %v137_v10, %v136_v9  ;;  %v139_v19 = vld [vmem:[%s3547_s29 + $0x28] sm:$0xff]  ;;  %v140_v25 = vld [vmem:[%s3547_s29 + $0x30] sm:$0xff]  ;;  %v141_v26 = vld [vmem:[%s3547_s29 + $0x38] sm:$0xff] }
  0x7c   :  { %v152_v23 = vpack.c.bf16 %v139_v19, %v138_v18  ;;  %v153_v27 = vpack.c.bf16 %v141_v26, %v140_v25  ;;  %v142_v28 = vld [vmem:[%s3547_s29 + $0x40] sm:$0xff]  ;;  %v143_v29 = vld [vmem:[%s3547_s29 + $0x48] sm:$0xff]  ;;  %v144_v31 = vld [vmem:[%s3547_s29 + $0x50] sm:$0xff] }
  0x7d   :  { %2183 = vmatpush3.bf16.msra.mxu1 %v2488_v16  ;;  %v154_v30 = vpack.c.bf16 %v143_v29, %v142_v28  ;;  %v145_v32 = vld [vmem:[%s3547_s29 + $0x58] sm:$0xff]  ;;  %v146_v34 = vld [vmem:[%s3547_s29 + $0x60] sm:$0xff]  ;;  %v147_v35 = vld [vmem:[%s3547_s29 + $0x68] sm:$0xff] }
  0x7e   :  { %222 = vmatpush1.bf16.msra.mxu0 %v2482_v4  ;;  %2184 = vmatprep.subr.bf16.mxu1 %v2489_v17  ;;  %v155_v33 = vpack.c.bf16 %v145_v32, %v144_v31  ;;  %v156_v36 = vpack.c.bf16 %v147_v35, %v146_v34  ;;  %v148_v37 = vld [vmem:[%s3547_s29 + $0x70] sm:$0xff]  ;;  %v149_v38 = vld [vmem:[%s3547_s29 + $0x78] sm:$0xff]  ;;  %v2500_v46 = vld [vmem:[%s3529_s5 + $0x8] sm:$0xff]  }
  0x7f   :  { %v157_v39 = vpack.c.bf16 %v149_v38, %v148_v37  ;;  %v2496_v42 = vld [vmem:[%s3527_s3 + $0x30] sm:$0xff]   ;;  %v2498_v44 = vld [vmem:[%s3527_s3 + $0x38] sm:$0xff]   ;;  %2356 = vmatprep.subr.bf16.mxu0 %v2499_v45  ;;  %v2503_v49 = vld [vmem:[%s3529_s5 + $0x20] sm:$0xff]  }
  0x80   :  { %v2501_v47 = vld [vmem:[%s3529_s5 + $0x10] sm:$0xff]   ;;  %v2502_v48 = vld [vmem:[%s3529_s5 + $0x18] sm:$0xff]   ;;  %v2504_v50 = vld [vmem:[%s3529_s5 + $0x28] sm:$0xff]  }
  0x81   :  { %2074 = vmatmul.mubr.msk.bf16.vlgmr.msra.gmra.mrb[0].mxu0 %vm194_vm0, %v150_v7  ;;  %2185 = vmatpush3.bf16.msra.mxu1 %v2490_v20  ;;  %v162_v54 = vld [vmem:[%s3526_s2] sm:$0x3] }
  0x82   :  { %261 = vmatprep.mubr.bf16.mxu0 %v2777_v0  ;;  %2186 = vmatprep.subr.bf16.mxu1 %v2491_v21  ;;  %v3118_v56 = vrot.slane %v162_v54, %v166_v53  ;;  %v3122_v57 = vrot.slane %v162_v54, %v170_v55 }
  0x83   :  { %2357 = vmatpush3.bf16.msra.mxu0 %v2499_v45 }
  0x84   :  { %2358 = vmatprep.subr.bf16.mxu0 %v2500_v46 }
  0x85   :  { %2187 = vmatpush3.bf16.msra.mxu1 %v2492_v22 }
  0x86   :  { %2188 = vmatprep.subr.bf16.mxu1 %v2493_v24 }
  0x87   :  { %2359 = vmatpush3.bf16.msra.mxu0 %v2500_v46 }
  0x88   :  { %2360 = vmatprep.subr.bf16.mxu0 %v2501_v47 }
  0x89   :  { %2075 = vmatmul.mubr.msk.bf16.gmra.mrb[4].mxu0 %vm194_vm0, %v151_v15  ;;  %2189 = vmatpush3.bf16.msra.mxu1 %v2494_v40 }
  0x8a   :  { %271 = vmatprep.mubr.bf16.mxu0 %v2777_v0  ;;  %2190 = vmatprep.subr.bf16.mxu1 %v2495_v41 }
  0x8b   :  { %2361 = vmatpush3.bf16.msra.mxu0 %v2501_v47 }
  0x8c   :  { %2362 = vmatprep.subr.bf16.mxu0 %v2502_v48 }
  0x8d   :  { %2191 = vmatpush3.bf16.msra.mxu1 %v2496_v42 }
  0x8e   :  { %2192 = vmatprep.subr.bf16.mxu1 %v2497_v43 }
  0x8f   :  { %2363 = vmatpush3.bf16.msra.mxu0 %v2502_v48 }
  0x90   :  { %2364 = vmatprep.subr.bf16.mxu0 %v2503_v49 }
  0x91   :  { %2076 = vmatmul.mubr.msk.bf16.gmra.mrb[8].mxu0 %vm194_vm0, %v152_v23  ;;  %2193 = vmatpush3.bf16.msra.mxu1 %v2498_v44 }
  0x92   :  { %281 = vmatprep.mubr.bf16.mxu0 %v2777_v0 }
  0x93   :  { %2365 = vmatpush3.bf16.msra.mxu0 %v2503_v49 }
  0x94   :  { %2366 = vmatprep.subr.bf16.mxu0 %v2504_v50 }
  0x97   :  { %2367 = vmatpush3.bf16.msra.mxu0 %v2504_v50 }
  0x99   :  { %2077 = vmatmul.mubr.msk.bf16.gmra.mrb[12].mxu0 %vm194_vm0, %v153_v27 }
  0x9a   :  { %291 = vmatprep.mubr.bf16.mxu0 %v2777_v0 }
  0xa1   :  { %2078 = vmatmul.mubr.msk.bf16.gmra.mrb[16].mxu0 %vm194_vm0, %v154_v30 }
  0xa2   :  { %301 = vmatprep.mubr.bf16.mxu0 %v2777_v0 }
  0xa9   :  { %2079 = vmatmul.mubr.msk.bf16.gmra.mrb[20].mxu0 %vm194_vm0, %v155_v33 }
  0xaa   :  { %311 = vmatprep.mubr.bf16.mxu0 %v2777_v0 }
  0xb1   :  { %2080 = vmatmul.mubr.msk.bf16.gmra.mrb[24].mxu0 %vm194_vm0, %v156_v36 }
  0xb2   :  { %321 = vmatprep.mubr.bf16.mxu0 %v2777_v0 }
  0xb9   :  { %2081 = vmatmul.mubr.msk.bf16.gmra.mrb[28].mxu0 %vm194_vm0, %v157_v39 }
 0x154   :  { %v253_v58 = vpop.f32.mrb[0].mxu0 }
 0x155   :  { %v254_v59 = vadd.f32 %v253_v58, %v3118_v56  ;;  %v255_v60 = vpop.f32.mrb[1].mxu0 }
 0x156   :  { %v256_v61 = vadd.f32 %v255_v60, %v3122_v57  ;;  %v257_v62 = vpop.f32.mrb[2].mxu0 }
 0x157   :  { %v258_v63 = vadd.f32 %v257_v62, %v3118_v56  ;;  %v259_v1 = vpop.f32.mrb[3].mxu0  ;;  %v332_v3 = vmax.f32 %v254_v59, 0.0 }
 0x158   :  { %v260_v2 = vadd.f32 %v259_v1, %v3122_v57  ;;  %v333_v5 = vmax.f32 %v256_v61, 0.0 }
 0x159   :  { %v334_v4 = vmax.f32 %v258_v63, 0.0 }
 0x15a   :  { %v335_v6 = vmax.f32 %v260_v2, 0.0 }
 0x15b   :  { %v364_v7 = vpack.c.bf16 %v334_v4, %v332_v3 }
 0x15c   :  { %v263_v8 = vpop.f32.mrb[4].mxu0  ;;  %v365_v9 = vpack.c.bf16 %v335_v6, %v333_v5 }
 0x15d   :  { %v264_v10 = vadd.f32 %v263_v8, %v3118_v56  ;;  %v265_v11 = vpop.f32.mrb[5].mxu0 }
 0x15e   :  { %v266_v12 = vadd.f32 %v265_v11, %v3122_v57  ;;  %v267_v13 = vpop.f32.mrb[6].mxu0  ;;  %547 = vmatprep.mubr.bf16.mxu1 %v365_v9 }
 0x15f   :  { %v268_v14 = vadd.f32 %v267_v13, %v3118_v56  ;;  %v269_v15 = vpop.f32.mrb[7].mxu0  ;;  %548 = vmatmul.mubr.bf16.vlgmr.msra.gmra.mrb[0].mxu1 %v364_v7  ;;  %v336_v17 = vmax.f32 %v264_v10, 0.0 }
 0x160   :  { %v270_v16 = vadd.f32 %v269_v15, %v3122_v57  ;;  %v337_v19 = vmax.f32 %v266_v12, 0.0 }
 0x161   :  { %v338_v18 = vmax.f32 %v268_v14, 0.0 }
 0x162   :  { %v339_v20 = vmax.f32 %v270_v16, 0.0 }
 0x163   :  { %v366_v21 = vpack.c.bf16 %v338_v18, %v336_v17 }
 0x164   :  { %v367_v22 = vpack.c.bf16 %v339_v20, %v337_v19  ;;  %v273_v23 = vpop.f32.mrb[8].mxu0 }
 0x165   :  { %v274_v24 = vadd.f32 %v273_v23, %v3118_v56  ;;  %v275_v25 = vpop.f32.mrb[9].mxu0 }
 0x166   :  { %v276_v26 = vadd.f32 %v275_v25, %v3122_v57  ;;  %v277_v27 = vpop.f32.mrb[10].mxu0  ;;  %555 = vmatprep.mubr.bf16.mxu1 %v367_v22 }
 0x167   :  { %v278_v28 = vadd.f32 %v277_v27, %v3118_v56  ;;  %v279_v29 = vpop.f32.mrb[11].mxu0  ;;  %556 = vmatmul.mubr.bf16.gmra.mrb[4].mxu1 %v366_v21  ;;  %v340_v31 = vmax.f32 %v274_v24, 0.0 }
 0x168   :  { %v280_v30 = vadd.f32 %v279_v29, %v3122_v57  ;;  %v341_v33 = vmax.f32 %v276_v26, 0.0 }
 0x169   :  { %v342_v32 = vmax.f32 %v278_v28, 0.0 }
 0x16a   :  { %v343_v34 = vmax.f32 %v280_v30, 0.0 }
 0x16b   :  { %v368_v35 = vpack.c.bf16 %v342_v32, %v340_v31 }
 0x16c   :  { %v369_v36 = vpack.c.bf16 %v343_v34, %v341_v33  ;;  %v283_v37 = vpop.f32.mrb[12].mxu0 }
 0x16d   :  { %v284_v38 = vadd.f32 %v283_v37, %v3118_v56  ;;  %v285_v39 = vpop.f32.mrb[13].mxu0 }
 0x16e   :  { %v286_v40 = vadd.f32 %v285_v39, %v3122_v57  ;;  %v287_v41 = vpop.f32.mrb[14].mxu0  ;;  %563 = vmatprep.mubr.bf16.mxu1 %v369_v36 }
 0x16f   :  { %v288_v42 = vadd.f32 %v287_v41, %v3118_v56  ;;  %v289_v43 = vpop.f32.mrb[15].mxu0  ;;  %564 = vmatmul.mubr.bf16.gmra.mrb[8].mxu1 %v368_v35  ;;  %v344_v45 = vmax.f32 %v284_v38, 0.0 }
 0x170   :  { %v290_v44 = vadd.f32 %v289_v43, %v3122_v57  ;;  %v345_v47 = vmax.f32 %v286_v40, 0.0 }
 0x171   :  { %v346_v46 = vmax.f32 %v288_v42, 0.0 }
 0x172   :  { %v347_v48 = vmax.f32 %v290_v44, 0.0 }
 0x173   :  { %v370_v49 = vpack.c.bf16 %v346_v46, %v344_v45 }
 0x174   :  { %v371_v50 = vpack.c.bf16 %v347_v48, %v345_v47  ;;  %v293_v51 = vpop.f32.mrb[16].mxu0 }
 0x175   :  { %v294_v54 = vadd.f32 %v293_v51, %v3118_v56  ;;  %v295_v58 = vpop.f32.mrb[17].mxu0  ;;  %v2509_v51 = vld [vmem:[#allocation7 + $0x10] sm:$0xff]  }
 0x176   :  { %v296_v59 = vadd.f32 %v295_v58, %v3122_v57  ;;  %v297_v60 = vpop.f32.mrb[18].mxu0  ;;  %571 = vmatprep.mubr.bf16.mxu1 %v371_v50  ;;  %v2508_v50 = vld [vmem:[#allocation7 + $0x8] sm:$0xff]   ;;  %v3162_v58 = vld [vmem:[#allocation2] ss:$0 sm:$0xff] }
 0x177   :  { %v298_v61 = vadd.f32 %v297_v60, %v3118_v56  ;;  %v299_v62 = vpop.f32.mrb[19].mxu0  ;;  %572 = vmatmul.mubr.bf16.gmra.mrb[12].mxu1 %v370_v49  ;;  %v348_v1 = vmax.f32 %v294_v54, 0.0  ;;  %v2505_v49 = vld [vmem:[%s3529_s5 + $0x30] sm:$0xff]  }
 0x178   :  { %v300_v63 = vadd.f32 %v299_v62, %v3122_v57  ;;  %v349_v3 = vmax.f32 %v296_v59, 0.0  ;;  %2368 = vmatprep.subr.bf16.mxu0 %v2505_v49 }
 0x179   :  { %v350_v2 = vmax.f32 %v298_v61, 0.0  ;;  %2369 = vmatpush3.bf16.msra.mxu0 %v2505_v49 }
 0x17a   :  { %v351_v4 = vmax.f32 %v300_v63, 0.0 }
 0x17b   :  { %v372_v5 = vpack.c.bf16 %v350_v2, %v348_v1 }
 0x17c   :  { %v373_v6 = vpack.c.bf16 %v351_v4, %v349_v3  ;;  %v303_v7 = vpop.f32.mrb[20].mxu0 }
 0x17d   :  { %v304_v8 = vadd.f32 %v303_v7, %v3118_v56  ;;  %v305_v9 = vpop.f32.mrb[21].mxu0 }
 0x17e   :  { %v306_v10 = vadd.f32 %v305_v9, %v3122_v57  ;;  %v307_v11 = vpop.f32.mrb[22].mxu0  ;;  %579 = vmatprep.mubr.bf16.mxu1 %v373_v6 }
 0x17f   :  { %v308_v12 = vadd.f32 %v307_v11, %v3118_v56  ;;  %v309_v13 = vpop.f32.mrb[23].mxu0  ;;  %580 = vmatmul.mubr.bf16.gmra.mrb[16].mxu1 %v372_v5  ;;  %v352_v15 = vmax.f32 %v304_v8, 0.0 }
 0x180   :  { %v310_v14 = vadd.f32 %v309_v13, %v3122_v57  ;;  %v353_v17 = vmax.f32 %v306_v10, 0.0 }
 0x181   :  { %v354_v16 = vmax.f32 %v308_v12, 0.0 }
 0x182   :  { %v355_v18 = vmax.f32 %v310_v14, 0.0 }
 0x183   :  { %v374_v19 = vpack.c.bf16 %v354_v16, %v352_v15 }
 0x184   :  { %v375_v20 = vpack.c.bf16 %v355_v18, %v353_v17  ;;  %v313_v21 = vpop.f32.mrb[24].mxu0 }
 0x185   :  { %v314_v22 = vadd.f32 %v313_v21, %v3118_v56  ;;  %v315_v23 = vpop.f32.mrb[25].mxu0 }
 0x186   :  { %v316_v24 = vadd.f32 %v315_v23, %v3122_v57  ;;  %v317_v25 = vpop.f32.mrb[26].mxu0  ;;  %587 = vmatprep.mubr.bf16.mxu1 %v375_v20 }
 0x187   :  { %v318_v26 = vadd.f32 %v317_v25, %v3118_v56  ;;  %v319_v27 = vpop.f32.mrb[27].mxu0  ;;  %588 = vmatmul.mubr.bf16.gmra.mrb[20].mxu1 %v374_v19  ;;  %v356_v29 = vmax.f32 %v314_v22, 0.0 }
 0x188   :  { %v320_v28 = vadd.f32 %v319_v27, %v3122_v57  ;;  %v357_v31 = vmax.f32 %v316_v24, 0.0 }
 0x189   :  { %v358_v30 = vmax.f32 %v318_v26, 0.0 }
 0x18a   :  { %v359_v32 = vmax.f32 %v320_v28, 0.0 }
 0x18b   :  { %v376_v33 = vpack.c.bf16 %v358_v30, %v356_v29 }
 0x18c   :  { %v377_v34 = vpack.c.bf16 %v359_v32, %v357_v31  ;;  %v323_v35 = vpop.f32.mrb[28].mxu0 }
 0x18d   :  { %v324_v36 = vadd.f32 %v323_v35, %v3118_v56  ;;  %v325_v37 = vpop.f32.mrb[29].mxu0 }
 0x18e   :  { %v326_v38 = vadd.f32 %v325_v37, %v3122_v57  ;;  %v327_v39 = vpop.f32.mrb[30].mxu0  ;;  %595 = vmatprep.mubr.bf16.mxu1 %v377_v34 }
 0x18f   :  { %v328_v40 = vadd.f32 %v327_v39, %v3118_v56  ;;  %v329_v41 = vpop.f32.mrb[31].mxu0  ;;  %596 = vmatmul.mubr.bf16.gmra.mrb[24].mxu1 %v376_v33  ;;  %v360_v43 = vmax.f32 %v324_v36, 0.0  ;;  %v2506_v56 = vld [vmem:[%s3529_s5 + $0x38] sm:$0xff]   ;;  %s2778_s5 = smov 96  }
 0x190   :  { %v330_v42 = vadd.f32 %v329_v41, %v3122_v57  ;;  %v361_v45 = vmax.f32 %v326_v38, 0.0  ;;  %2370 = vmatprep.subr.bf16.mxu0 %v2506_v56  ;;  %v2507_v57 = vld [vmem:[#allocation7] sm:$0xff]  }
 0x191   :  { %v362_v44 = vmax.f32 %v328_v40, 0.0  ;;  %2371 = vmatpush3.bf16.msra.mxu0 %v2506_v56  ;;  %2456 = vmatprep.subr.bf16.mxu1 %v2507_v57 }
 0x192   :  { %v363_v46 = vmax.f32 %v330_v42, 0.0  ;;  %2388 = vmatprep.subr.bf16.mxu0 %v2507_v57  ;;  %2460 = vmatpush3.bf16.msra.mxu1 %v2507_v57 }
 0x193   :  { %v378_v47 = vpack.c.bf16 %v362_v44, %v360_v43  ;;  %2457 = vmatprep.subr.bf16.mxu1 %v2508_v50 }
 0x194   :  { %v379_v48 = vpack.c.bf16 %v363_v46, %v361_v45 }
 0x196   :  { %603 = vmatprep.mubr.bf16.mxu1 %v379_v48  ;;  %2461 = vmatpush3.bf16.msra.mxu1 %v2508_v50 }
 0x197   :  { %604 = vmatmul.mubr.bf16.gmra.mrb[28].mxu1 %v378_v47  ;;  %2458 = vmatprep.subr.bf16.mxu1 %v2509_v51 }
 0x19a   :  { %2462 = vmatpush3.bf16.msra.mxu1 %v2509_v51 }
 0x232   :  { %v2194_v54 = vpop.f32.mrb[0].mxu1 }
 0x233   :  { %v2195_v59 = vpop.f32.mrb[1].mxu1 }
 0x234   :  { %v2196_v60 = vadd.f32 %v2195_v59, %v2194_v54  ;;  %v2197_v61 = vpop.f32.mrb[2].mxu1 }
 0x235   :  { %v2198_v62 = vpop.f32.mrb[3].mxu1 }
 0x236   :  { %v550_v63 = vadd.f32 %v2196_v60, %v3162_v58  ;;  %v2199_v1 = vadd.f32 %v2198_v62, %v2197_v61 }
 0x238   :  { %v553_v2 = vadd.f32 %v2199_v1, %v3162_v58  ;;  %v612_v3 = vmax.f32 %v550_v63, 0.0 }
 0x23a   :  { %v613_v4 = vmax.f32 %v553_v2, 0.0  ;;  %v2200_v5 = vpop.f32.mrb[4].mxu1 }
 0x23b   :  { %v2201_v6 = vpop.f32.mrb[5].mxu1 }
 0x23c   :  { %v2202_v7 = vadd.f32 %v2201_v6, %v2200_v5  ;;  %v2203_v8 = vpop.f32.mrb[6].mxu1  ;;  %v628_v9 = vpack.c.bf16 %v613_v4, %v612_v3 }
 0x23d   :  { %v2204_v10 = vpop.f32.mrb[7].mxu1 }
 0x23e   :  { %v558_v11 = vadd.f32 %v2202_v7, %v3162_v58  ;;  %v2205_v12 = vadd.f32 %v2204_v10, %v2203_v8  ;;  %2372 = vmatprep.mubr.bf16.mxu0 %v628_v9 }
 0x240   :  { %v561_v13 = vadd.f32 %v2205_v12, %v3162_v58  ;;  %v614_v14 = vmax.f32 %v558_v11, 0.0 }
 0x242   :  { %v615_v15 = vmax.f32 %v561_v13, 0.0  ;;  %v2206_v16 = vpop.f32.mrb[8].mxu1 }
 0x243   :  { %v2207_v17 = vpop.f32.mrb[9].mxu1 }
 0x244   :  { %v629_v18 = vpack.c.bf16 %v615_v15, %v614_v14  ;;  %v2208_v19 = vadd.f32 %v2207_v17, %v2206_v16  ;;  %v2209_v20 = vpop.f32.mrb[10].mxu1 }
 0x245   :  { %v2210_v21 = vpop.f32.mrb[11].mxu1 }
 0x246   :  { %v566_v22 = vadd.f32 %v2208_v19, %v3162_v58  ;;  %v2211_v23 = vadd.f32 %v2210_v21, %v2209_v20  ;;  %2373 = vmatmul.mubr.bf16.vlgmr.msra.gmra.mrb[32].mxu0 %v629_v18 }
 0x247   :  { %2389 = vmatpush3.bf16.msra.mxu0 %v2507_v57 }
 0x248   :  { %v569_v24 = vadd.f32 %v2211_v23, %v3162_v58  ;;  %2390 = vmatprep.subr.bf16.mxu0 %v2508_v50  ;;  %v616_v25 = vmax.f32 %v566_v22, 0.0 }
 0x24a   :  { %v617_v26 = vmax.f32 %v569_v24, 0.0  ;;  %v2212_v27 = vpop.f32.mrb[12].mxu1  ;;  %v2510_v24 = vld [vmem:[#allocation7 + $0x18] sm:$0xff]  }
 0x24b   :  { %v2213_v28 = vpop.f32.mrb[13].mxu1  ;;  %2391 = vmatpush3.bf16.msra.mxu0 %v2508_v50  ;;  %2459 = vmatprep.subr.bf16.mxu1 %v2510_v24 }
 0x24c   :  { %v2214_v29 = vadd.f32 %v2213_v28, %v2212_v27  ;;  %v2215_v30 = vpop.f32.mrb[14].mxu1  ;;  %v630_v31 = vpack.c.bf16 %v617_v26, %v616_v25  ;;  %2392 = vmatprep.subr.bf16.mxu0 %v2509_v51  ;;  %2463 = vmatpush3.bf16.msra.mxu1 %v2510_v24  ;;  %v2099_v25 = vld [vmem:[#allocation5] ss:$0 sm:$0xff] }
 0x24d   :  { %v2216_v32 = vpop.f32.mrb[15].mxu1 }
 0x24e   :  { %v574_v33 = vadd.f32 %v2214_v29, %v3162_v58  ;;  %v2217_v34 = vadd.f32 %v2216_v32, %v2215_v30  ;;  %2376 = vmatprep.mubr.bf16.mxu0 %v630_v31 }
 0x24f   :  { %2393 = vmatpush3.bf16.msra.mxu0 %v2509_v51 }
 0x250   :  { %v577_v35 = vadd.f32 %v2217_v34, %v3162_v58  ;;  %v618_v36 = vmax.f32 %v574_v33, 0.0  ;;  %2394 = vmatprep.subr.bf16.mxu0 %v2510_v24 }
 0x252   :  { %v619_v37 = vmax.f32 %v577_v35, 0.0  ;;  %v2218_v38 = vpop.f32.mrb[16].mxu1 }
 0x253   :  { %v2219_v39 = vpop.f32.mrb[17].mxu1  ;;  %2395 = vmatpush3.bf16.msra.mxu0 %v2510_v24 }
 0x254   :  { %v2220_v40 = vadd.f32 %v2219_v39, %v2218_v38  ;;  %v2221_v41 = vpop.f32.mrb[18].mxu1  ;;  %v631_v42 = vpack.c.bf16 %v619_v37, %v618_v36 }
 0x255   :  { %v2222_v43 = vpop.f32.mrb[19].mxu1 }
 0x256   :  { %v582_v44 = vadd.f32 %v2220_v40, %v3162_v58  ;;  %v2223_v45 = vadd.f32 %v2222_v43, %v2221_v41  ;;  %2377 = vmatmul.mubr.bf16.gmra.mrb[36].mxu0 %v631_v42 }
 0x258   :  { %v585_v46 = vadd.f32 %v2223_v45, %v3162_v58  ;;  %v620_v47 = vmax.f32 %v582_v44, 0.0 }
 0x25a   :  { %v621_v48 = vmax.f32 %v585_v46, 0.0  ;;  %v2224_v49 = vpop.f32.mrb[20].mxu1 }
 0x25b   :  { %v2225_v56 = vpop.f32.mrb[21].mxu1 }
 0x25c   :  { %v2226_v57 = vadd.f32 %v2225_v56, %v2224_v49  ;;  %v2227_v50 = vpop.f32.mrb[22].mxu1  ;;  %v632_v51 = vpack.c.bf16 %v621_v48, %v620_v47 }
 0x25d   :  { %v2228_v54 = vpop.f32.mrb[23].mxu1 }
 0x25e   :  { %v590_v59 = vadd.f32 %v2226_v57, %v3162_v58  ;;  %v2229_v60 = vadd.f32 %v2228_v54, %v2227_v50  ;;  %2380 = vmatprep.mubr.bf16.mxu0 %v632_v51 }
 0x260   :  { %v593_v61 = vadd.f32 %v2229_v60, %v3162_v58  ;;  %v622_v62 = vmax.f32 %v590_v59, 0.0 }
 0x262   :  { %v623_v63 = vmax.f32 %v593_v61, 0.0  ;;  %v2230_v1 = vpop.f32.mrb[24].mxu1 }
 0x263   :  { %v2231_v2 = vpop.f32.mrb[25].mxu1 }
 0x264   :  { %v2232_v3 = vadd.f32 %v2231_v2, %v2230_v1  ;;  %v2233_v4 = vpop.f32.mrb[26].mxu1  ;;  %v633_v5 = vpack.c.bf16 %v623_v63, %v622_v62 }
 0x265   :  { %v2234_v6 = vpop.f32.mrb[27].mxu1 }
 0x266   :  { %v598_v7 = vadd.f32 %v2232_v3, %v3162_v58  ;;  %v2235_v8 = vadd.f32 %v2234_v6, %v2233_v4  ;;  %2381 = vmatmul.mubr.bf16.gmra.mrb[40].mxu0 %v633_v5 }
 0x268   :  { %v601_v9 = vadd.f32 %v2235_v8, %v3162_v58  ;;  %v624_v10 = vmax.f32 %v598_v7, 0.0 }
 0x26a   :  { %v625_v11 = vmax.f32 %v601_v9, 0.0  ;;  %v2236_v12 = vpop.f32.mrb[28].mxu1 }
 0x26b   :  { %v2237_v13 = vpop.f32.mrb[29].mxu1 }
 0x26c   :  { %v2238_v14 = vadd.f32 %v2237_v13, %v2236_v12  ;;  %v2239_v15 = vpop.f32.mrb[30].mxu1  ;;  %v634_v16 = vpack.c.bf16 %v625_v11, %v624_v10 }
 0x26d   :  { %v2240_v17 = vpop.f32.mrb[31].mxu1 }
 0x26e   :  { %v606_v18 = vadd.f32 %v2238_v14, %v3162_v58  ;;  %v2241_v19 = vadd.f32 %v2240_v17, %v2239_v15  ;;  %2384 = vmatprep.mubr.bf16.mxu0 %v634_v16 }
 0x270   :  { %v609_v20 = vadd.f32 %v2241_v19, %v3162_v58  ;;  %v626_v21 = vmax.f32 %v606_v18, 0.0 }
 0x272   :  { %v627_v22 = vmax.f32 %v609_v20, 0.0 }
 0x274   :  { %v635_v23 = vpack.c.bf16 %v627_v22, %v626_v21  ;;  %v3188_v22 = vld [vmem:[#allocation8] ss:$0 sm:$0xff] }
 0x276   :  { %2385 = vmatmul.mubr.bf16.gmra.mrb[44].mxu0 %v635_v23 }
 0x319   :  { %v2374_v26 = vpop.f32.mrb[32].mxu0 }
 0x31a   :  { %v750_v27 = vadd.f32 %v2374_v26, %v2099_v25  ;;  %v741_v28 = vpop.f32.mrb[33].mxu0 }
 0x31b   :  { %v742_v29 = vadd.f32 %v2099_v25, %v741_v28  ;;  %v2375_v30 = vpop.f32.mrb[34].mxu0 }
 0x31c   :  { %v753_v31 = vadd.f32 %v2375_v30, %v2099_v25  ;;  %v744_v32 = vpop.f32.mrb[35].mxu0  ;;  %v806_v34 = vmax.f32 %v750_v27, 0.0 }
 0x31d   :  { %v745_v33 = vadd.f32 %v2099_v25, %v744_v32  ;;  %v804_v35 = vmax.f32 %v742_v29, 0.0 }
 0x31e   :  { %v807_v58 = vmax.f32 %v753_v31, 0.0 }
 0x31f   :  { %v805_v36 = vmax.f32 %v745_v33, 0.0 }
 0x320   :  { %v821_v37 = vpack.c.bf16 %v807_v58, %v806_v34 }
 0x321   :  { %v820_v38 = vpack.c.bf16 %v805_v36, %v804_v35 }
 0x323   :  { %2396 = vmatprep.mubr.msk.bf16.mxu0 %vm867_vm1, %v820_v38 }
 0x324   :  { %2397 = vmatmul.mubr.msk.bf16.vlgmr.msra.gmra.mrb[48].mxu0 %vm867_vm1, %v821_v37 }
 0x329   :  { %v2378_v39 = vpop.f32.mrb[36].mxu0 }
 0x32a   :  { %v766_v40 = vadd.f32 %v2378_v39, %v2099_v25  ;;  %v757_v41 = vpop.f32.mrb[37].mxu0 }
 0x32b   :  { %v758_v42 = vadd.f32 %v2099_v25, %v757_v41  ;;  %v2379_v43 = vpop.f32.mrb[38].mxu0 }
 0x32c   :  { %v769_v44 = vadd.f32 %v2379_v43, %v2099_v25  ;;  %v760_v45 = vpop.f32.mrb[39].mxu0  ;;  %v810_v47 = vmax.f32 %v766_v40, 0.0 }
 0x32d   :  { %v761_v46 = vadd.f32 %v2099_v25, %v760_v45  ;;  %v808_v49 = vmax.f32 %v758_v42, 0.0 }
 0x32e   :  { %v811_v48 = vmax.f32 %v769_v44, 0.0 }
 0x32f   :  { %v809_v56 = vmax.f32 %v761_v46, 0.0 }
 0x330   :  { %v823_v57 = vpack.c.bf16 %v811_v48, %v810_v47 }
 0x331   :  { %v822_v50 = vpack.c.bf16 %v809_v56, %v808_v49 }
 0x333   :  { %2400 = vmatprep.mubr.msk.bf16.mxu0 %vm867_vm1, %v822_v50 }
 0x334   :  { %2401 = vmatmul.mubr.msk.bf16.gmra.mrb[52].mxu0 %vm867_vm1, %v823_v57 }
 0x339   :  { %v2382_v51 = vpop.f32.mrb[40].mxu0 }
 0x33a   :  { %v782_v54 = vadd.f32 %v2382_v51, %v2099_v25  ;;  %v773_v59 = vpop.f32.mrb[41].mxu0 }
 0x33b   :  { %v774_v60 = vadd.f32 %v2099_v25, %v773_v59  ;;  %v2383_v61 = vpop.f32.mrb[42].mxu0 }
 0x33c   :  { %v785_v62 = vadd.f32 %v2383_v61, %v2099_v25  ;;  %v776_v63 = vpop.f32.mrb[43].mxu0  ;;  %v814_v2 = vmax.f32 %v782_v54, 0.0 }
 0x33d   :  { %v777_v1 = vadd.f32 %v2099_v25, %v776_v63  ;;  %v812_v4 = vmax.f32 %v774_v60, 0.0 }
 0x33e   :  { %v815_v3 = vmax.f32 %v785_v62, 0.0 }
 0x33f   :  { %v813_v5 = vmax.f32 %v777_v1, 0.0 }
 0x340   :  { %v825_v6 = vpack.c.bf16 %v815_v3, %v814_v2 }
 0x341   :  { %v824_v7 = vpack.c.bf16 %v813_v5, %v812_v4 }
 0x343   :  { %2404 = vmatprep.mubr.msk.bf16.mxu1 %vm867_vm1, %v824_v7 }
 0x344   :  { %2405 = vmatmul.mubr.msk.bf16.vlgmr.msra.gmra.mrb[32].mxu1 %vm867_vm1, %v825_v6 }
 0x349   :  { %v2386_v8 = vpop.f32.mrb[44].mxu0 }
 0x34a   :  { %v798_v9 = vadd.f32 %v2386_v8, %v2099_v25  ;;  %v789_v10 = vpop.f32.mrb[45].mxu0 }
 0x34b   :  { %v790_v11 = vadd.f32 %v2099_v25, %v789_v10  ;;  %v2387_v12 = vpop.f32.mrb[46].mxu0 }
 0x34c   :  { %v801_v13 = vadd.f32 %v2387_v12, %v2099_v25  ;;  %v792_v14 = vpop.f32.mrb[47].mxu0  ;;  %v818_v16 = vmax.f32 %v798_v9, 0.0 }
 0x34d   :  { %v793_v15 = vadd.f32 %v2099_v25, %v792_v14  ;;  %v816_v18 = vmax.f32 %v790_v11, 0.0 }
 0x34e   :  { %v819_v17 = vmax.f32 %v801_v13, 0.0 }
 0x34f   :  { %v817_v19 = vmax.f32 %v793_v15, 0.0 }
 0x350   :  { %v827_v20 = vpack.c.bf16 %v819_v17, %v818_v16 }
 0x351   :  { %v826_v21 = vpack.c.bf16 %v817_v19, %v816_v18 }
 0x353   :  { %2408 = vmatprep.mubr.msk.bf16.mxu1 %vm867_vm1, %v826_v21 }
 0x354   :  { %2409 = vmatmul.mubr.msk.bf16.gmra.mrb[36].mxu1 %vm867_vm1, %v827_v20 }
 0x3f7   :  { %v2398_v23 = vpop.f32.mrb[48].mxu0 }
 0x3f8   :  { %v3191_v24 = vadd.f32 %v2398_v23, %v3188_v22  ;;  %v926_v26 = vpop.f32.mrb[49].mxu0 }
 0x3f9   :  { %v3194_v27 = vadd.f32 %v3188_v22, %v926_v26  ;;  %v2399_v25 = vpop.f32.mrb[50].mxu0 }
 0x3fa   :  { %v991_v28 = vmul.f32 0.5, %v3191_v24  ;;  %v3198_v29 = vadd.f32 %v2399_v25, %v3188_v22  ;;  %v929_v30 = vpop.f32.mrb[51].mxu0 }
 0x3fb   :  { %v989_v31 = vmul.f32 0.5, %v3194_v27  ;;  %v3202_v32 = vadd.f32 %v3188_v22, %v929_v30 }
 0x3fc   :  { %v1009_v33 = vmul.f32 1.442695, %v991_v28  ;;  %v992_v34 = vmul.f32 0.5, %v3198_v29 }
 0x3fd   :  { %v1005_v58 = vmul.f32 1.442695, %v989_v31  ;;  %v990_v35 = vmul.f32 0.5, %v3202_v32 }
 0x3fe   :  { %2557 = vpow2.f32 %v1009_v33  ;;  %v1011_v36 = vmul.f32 1.442695, %v992_v34 }
 0x3ff   :  { %2559 = vpow2.f32 %v1005_v58  ;;  %v1007_v37 = vmul.f32 1.442695, %v990_v35 }
 0x400   :  { %2561 = vpow2.f32 %v1011_v36 }
 0x401   :  { %2563 = vpow2.f32 %v1007_v37 }
 0x407   :  { %v2402_v38 = vpop.f32.mrb[52].mxu0 }
 0x408   :  { %v2558_v39 = vpop.eup %2557  ;;  %v3207_v40 = vadd.f32 %v2402_v38, %v3188_v22  ;;  %v942_v41 = vpop.f32.mrb[53].mxu0 }
 0x409   :  { %v2560_v42 = vpop.eup %2559  ;;  %v3210_v43 = vadd.f32 %v3188_v22, %v942_v41  ;;  %1057 = vrot.lane.b32.xlu1 %v2558_v39, %s2778_s5  ;;  %v2403_v44 = vpop.f32.mrb[54].mxu0 }
 0x40a   :  { %v3214_v45 = vadd.f32 %v2403_v44, %v3188_v22  ;;  %v945_v46 = vpop.f32.mrb[55].mxu0  ;;  %1053 = vrot.lane.b32.xlu0 %v2560_v42, %s2778_s5  ;;  %v995_v47 = vmul.f32 0.5, %v3207_v40  ;;  %v2562_v56 = vpop.eup %2561 }
 0x40b   :  { %v993_v48 = vmul.f32 0.5, %v3210_v43  ;;  %v3220_v49 = vadd.f32 %v3188_v22, %v945_v46  ;;  %v2564_v57 = vpop.eup %2563  ;;  %v2511_v46 = vld [vmem:[#allocation10] sm:$0xff]  }
 0x40c   :  { %v996_v51 = vmul.f32 0.5, %v3214_v45  ;;  %v1017_v59 = vmul.f32 1.442695, %v995_v47  ;;  %v2512_v47 = vld [vmem:[#allocation10 + $0x8] sm:$0xff]   ;;  %2412 = vmatprep.subr.bf16.mxu0 %v2511_v46 }
 0x40d   :  { %v1013_v50 = vmul.f32 1.442695, %v993_v48  ;;  %v994_v54 = vmul.f32 0.5, %v3220_v49  ;;  %1059 = vrot.lane.b32.xlu1 %v2562_v56, %s2778_s5  ;;  %2413 = vmatpush3.bf16.msra.mxu0 %v2511_v46 }
 0x40e   :  { %1055 = vrot.lane.b32.xlu0 %v2564_v57, %s2778_s5  ;;  %v1019_v61 = vmul.f32 1.442695, %v996_v51  ;;  %2414 = vmatprep.subr.bf16.mxu0 %v2512_v47 }
 0x40f   :  { %2565 = vpow2.f32 %v1013_v50  ;;  %v1015_v60 = vmul.f32 1.442695, %v994_v54  ;;  %v2589_v54 = vld [vmem:[%s3547_s29 + $0x10] sm:$0xff] }
 0x411   :  { %2567 = vpow2.f32 %v1015_v60  ;;  %2415 = vmatpush3.bf16.msra.mxu0 %v2512_v47  ;;  %v2590_v60 = vld [vmem:[%s3547_s29] sm:$0xff]  ;;  %v2598_v47 = vld [vmem:[%s3547_s29 + $0x48] sm:$0xff] }
 0x412   :  { %2569 = vpow2.f32 %v1017_v59 }
 0x413   :  { %2571 = vpow2.f32 %v1019_v61 }
 0x417   :  { %v2406_v62 = vpop.f32.mrb[32].mxu1 }
 0x418   :  { %v3227_v63 = vadd.f32 %v2406_v62, %v3188_v22  ;;  %v958_v1 = vpop.f32.mrb[33].mxu1 }
 0x419   :  { %v2566_v2 = vpop.eup %2565  ;;  %v3230_v3 = vadd.f32 %v3188_v22, %v958_v1  ;;  %v2407_v4 = vpop.f32.mrb[34].mxu1  ;;  %v2591_v1 = vld [vmem:[%s3547_s29 + $0x18] sm:$0xff] }
 0x41a   :  { %v3233_v5 = vadd.f32 %v2407_v4, %v3188_v22  ;;  %v961_v6 = vpop.f32.mrb[35].mxu1  ;;  %1061 = vrot.lane.b32.xlu0 %v2566_v2, %s2778_s5  ;;  %v999_v8 = vmul.f32 0.5, %v3227_v63 }
 0x41b   :  { %v2568_v7 = vpop.eup %2567  ;;  %v997_v9 = vmul.f32 0.5, %v3230_v3  ;;  %v3239_v10 = vadd.f32 %v3188_v22, %v961_v6  ;;  %v2592_v6 = vld [vmem:[%s3547_s29 + $0x8] sm:$0xff] }
 0x41c   :  { %1063 = vrot.lane.b32.xlu1 %v2568_v7, %s2778_s5  ;;  %v2570_v11 = vpop.eup %2569  ;;  %v1000_v13 = vmul.f32 0.5, %v3233_v5  ;;  %v1025_v16 = vmul.f32 1.442695, %v999_v8 }
 0x41d   :  { %v1021_v12 = vmul.f32 1.442695, %v997_v9  ;;  %v998_v14 = vmul.f32 0.5, %v3239_v10  ;;  %v2572_v15 = vpop.eup %2571 }
 0x41e   :  { %1065 = vrot.lane.b32.xlu0 %v2570_v11, %s2778_s5  ;;  %v1027_v18 = vmul.f32 1.442695, %v1000_v13 }
 0x41f   :  { %2573 = vpow2.f32 %v1021_v12  ;;  %v1023_v17 = vmul.f32 1.442695, %v998_v14 }
 0x420   :  { %1067 = vrot.lane.b32.xlu1 %v2572_v15, %s2778_s5 }
 0x421   :  { %2575 = vpow2.f32 %v1023_v17 }
 0x422   :  { %2577 = vpow2.f32 %v1025_v16  ;;  %v2593_v16 = vld [vmem:[%s3547_s29 + $0x20] sm:$0xff] }
 0x423   :  { %2579 = vpow2.f32 %v1027_v18 }
 0x427   :  { %v2410_v19 = vpop.f32.mrb[36].mxu1 }
 0x428   :  { %v3247_v20 = vadd.f32 %v2410_v19, %v3188_v22  ;;  %v974_v21 = vpop.f32.mrb[37].mxu1  ;;  %v2594_v19 = vld [vmem:[%s3547_s29 + $0x28] sm:$0xff] }
 0x429   :  { %v2574_v23 = vpop.eup %2573  ;;  %v3250_v26 = vadd.f32 %v3188_v22, %v974_v21  ;;  %v2411_v25 = vpop.f32.mrb[38].mxu1 }
 0x42a   :  { %v3253_v28 = vadd.f32 %v2411_v25, %v3188_v22  ;;  %v977_v30 = vpop.f32.mrb[39].mxu1  ;;  %1069 = vrot.lane.b32.xlu0 %v2574_v23, %s2778_s5  ;;  %v1003_v33 = vmul.f32 0.5, %v3247_v20 }
 0x42b   :  { %v2576_v31 = vpop.eup %2575  ;;  %v1001_v34 = vmul.f32 0.5, %v3250_v26  ;;  %v3259_v58 = vadd.f32 %v3188_v22, %v977_v30 }
 0x42c   :  { %1071 = vrot.lane.b32.xlu1 %v2576_v31, %s2778_s5  ;;  %v2578_v35 = vpop.eup %2577  ;;  %v1004_v37 = vmul.f32 0.5, %v3253_v28  ;;  %v1033_v41 = vmul.f32 1.442695, %v1003_v33  ;;  %v2595_v31 = vld [vmem:[%s3547_s29 + $0x30] sm:$0xff] }
 0x42d   :  { %v1029_v36 = vmul.f32 1.442695, %v1001_v34  ;;  %v1002_v38 = vmul.f32 0.5, %v3259_v58  ;;  %v2580_v39 = vpop.eup %2579 }
 0x42e   :  { %1073 = vrot.lane.b32.xlu0 %v2578_v35, %s2778_s5  ;;  %v1035_v44 = vmul.f32 1.442695, %v1004_v37  ;;  %v2596_v35 = vld [vmem:[%s3547_s29 + $0x38] sm:$0xff] }
 0x42f   :  { %2581 = vpow2.f32 %v1029_v36  ;;  %v1031_v42 = vmul.f32 1.442695, %v1002_v38 }
 0x430   :  { %1075 = vrot.lane.b32.xlu1 %v2580_v39, %s2778_s5 }
 0x431   :  { %2583 = vpow2.f32 %v1031_v42 }
 0x432   :  { %2585 = vpow2.f32 %v1033_v41 }
 0x433   :  { %2587 = vpow2.f32 %v1035_v44  ;;  %v2597_v44 = vld [vmem:[%s3547_s29 + $0x40] sm:$0xff] }
 0x439   :  { %v2582_v22 = vpop.eup %2581 }
 0x43a   :  { %1077 = vrot.lane.b32.xlu0 %v2582_v22, %s2778_s5 }
 0x43b   :  { %v2584_v48 = vpop.eup %2583 }
 0x43c   :  { %1079 = vrot.lane.b32.xlu1 %v2584_v48, %s2778_s5  ;;  %v2586_v56 = vpop.eup %2585 }
 0x43d   :  { %v2588_v57 = vpop.eup %2587 }
 0x43e   :  { %1081 = vrot.lane.b32.xlu0 %v2586_v56, %s2778_s5 }
 0x440   :  { %1083 = vrot.lane.b32.xlu1 %v2588_v57, %s2778_s5 }
 0x47b   :  { %v1058_v50 = vpop.permute.xlu1 %1057 }
 0x47c   :  { %v1054_v51 = vpop.permute.xlu0 %1053  ;;  %v1103_v59 = vmul.f32 %v2589_v54, %v1058_v50 }
 0x47d   :  { %v1101_v61 = vmul.f32 %v2590_v60, %v1054_v51  ;;  %v2599_v51 = vld [vmem:[%s3547_s29 + $0x50] sm:$0xff]  ;;  %v2600_v60 = vld [vmem:[%s3547_s29 + $0x58] sm:$0xff] }
 0x47e   :  { %v1119_v8 = vadd.f32 %v1103_v59, %v3191_v24 }
 0x47f   :  { %v1060_v62 = vpop.permute.xlu1 %1059  ;;  %v1117_v11 = vadd.f32 %v1101_v61, %v3194_v27 }
 0x480   :  { %v1104_v2 = vmul.f32 %v2591_v1, %v1060_v62  ;;  %v1056_v4 = vpop.permute.xlu0 %1055 }
 0x481   :  { %v1102_v7 = vmul.f32 %v2592_v6, %v1056_v4 }
 0x482   :  { %v1120_v9 = vadd.f32 %v1104_v2, %v3198_v29 }
 0x483   :  { %v1118_v12 = vadd.f32 %v1102_v7, %v3202_v32  ;;  %v2513_v7 = vld [vmem:[%s3535_s11] sm:$0xff]  }
 0x484   :  { %v1134_v13 = vpack.c.bf16 %v1120_v9, %v1119_v8  ;;  %v2514_v8 = vld [vmem:[%s3535_s11 + $0x8] sm:$0xff]   ;;  %v2601_v9 = vld [vmem:[%s3547_s29 + $0x60] sm:$0xff]  ;;  %2432 = vmatprep.subr.bf16.mxu1 %v2513_v7 }
 0x485   :  { %v1133_v14 = vpack.c.bf16 %v1118_v12, %v1117_v11  ;;  %2433 = vmatpush3.bf16.msra.mxu1 %v2513_v7 }
 0x486   :  { %1162 = vrot.lane.b32.xlu1 %v1134_v13, %s2778_s5  ;;  %v2602_v13 = vld [vmem:[%s3547_s29 + $0x68] sm:$0xff]  ;;  %2434 = vmatprep.subr.bf16.mxu1 %v2514_v8 }
 0x487   :  { %1160 = vrot.lane.b32.xlu0 %v1133_v14, %s2778_s5 }
 0x489   :  { %2435 = vmatpush3.bf16.msra.mxu1 %v2514_v8 }
 0x48c   :  { %v1062_v15 = vpop.permute.xlu0 %1061 }
 0x48d   :  { %v1105_v17 = vmul.f32 %v2593_v16, %v1062_v15 }
 0x48e   :  { %v1064_v18 = vpop.permute.xlu1 %1063 }
 0x48f   :  { %v1106_v21 = vmul.f32 %v2594_v19, %v1064_v18  ;;  %v1121_v25 = vadd.f32 %v1105_v17, %v3210_v43  ;;  %v2603_v18 = vld [vmem:[%s3547_s29 + $0x70] sm:$0xff] }
 0x490   :  { %v1066_v23 = vpop.permute.xlu0 %1065 }
 0x491   :  { %v1122_v30 = vadd.f32 %v1106_v21, %v3220_v49  ;;  %v1107_v33 = vmul.f32 %v2595_v31, %v1066_v23  ;;  %v2604_v23 = vld [vmem:[%s3547_s29 + $0x78] sm:$0xff] }
 0x492   :  { %v1068_v34 = vpop.permute.xlu1 %1067 }
 0x493   :  { %v1108_v36 = vmul.f32 %v2596_v35, %v1068_v34  ;;  %v1135_v37 = vpack.c.bf16 %v1122_v30, %v1121_v25  ;;  %v1123_v38 = vadd.f32 %v1107_v33, %v3207_v40 }
 0x495   :  { %v1124_v39 = vadd.f32 %v1108_v36, %v3214_v45  ;;  %1164 = vrot.lane.b32.xlu0 %v1135_v37, %s2778_s5 }
 0x497   :  { %v1136_v41 = vpack.c.bf16 %v1124_v39, %v1123_v38 }
 0x499   :  { %1166 = vrot.lane.b32.xlu1 %v1136_v41, %s2778_s5 }
 0x49c   :  { %v1070_v42 = vpop.permute.xlu0 %1069 }
 0x49d   :  { %v1109_v22 = vmul.f32 %v2597_v44, %v1070_v42 }
 0x49e   :  { %v1072_v46 = vpop.permute.xlu1 %1071 }
 0x49f   :  { %v1110_v48 = vmul.f32 %v2598_v47, %v1072_v46  ;;  %v1125_v57 = vadd.f32 %v1109_v22, %v3230_v3  ;;  %v2515_v22 = vld [vmem:[%s3535_s11 + $0x10] sm:$0xff]   ;;  %v2516_v46 = vld [vmem:[%s3535_s11 + $0x18] sm:$0xff]   ;;  %v2517_v47 = vld [vmem:[%s3537_s13] ss:$8 sps:$4 sm:$0xff]  }
 0x4a0   :  { %v1074_v56 = vpop.permute.xlu0 %1073  ;;  %2436 = vmatprep.subr.bf16.mxu1 %v2515_v22 }
 0x4a1   :  { %v1126_v50 = vadd.f32 %v1110_v48, %v3239_v10  ;;  %v1111_v54 = vmul.f32 %v2599_v51, %v1074_v56  ;;  %2437 = vmatpush3.bf16.msra.mxu1 %v2515_v22  ;;  %v2519_v48 = vld [vmem:[%s3537_s13 + $0x4] ss:$8 sps:$4 sm:$0xff]   ;;  %v2522_v56 = vld [vmem:[%s3537_s13 + $0x14] ss:$8 sps:$4 sm:$0xff]   ;;  %v2523_v51 = vld [vmem:[%s3537_s13 + $0x20] ss:$8 sps:$4 sm:$0xff]  }
 0x4a2   :  { %v1076_v59 = vpop.permute.xlu1 %1075  ;;  %2438 = vmatprep.subr.bf16.mxu1 %v2516_v46  ;;  %1625 = vmatprep.subr.bf16.mxu0 %v2519_v48 }
 0x4a3   :  { %v1112_v61 = vmul.f32 %v2600_v60, %v1076_v59  ;;  %v1137_v62 = vpack.c.bf16 %v1126_v50, %v1125_v57  ;;  %v1127_v1 = vadd.f32 %v1111_v54, %v3227_v63  ;;  %v2520_v57 = vld [vmem:[%s3537_s13 + $0x10] ss:$8 sps:$4 sm:$0xff]   ;;  %v2525_v50 = vld [vmem:[%s3537_s13 + $0x24] ss:$8 sps:$4 sm:$0xff]   ;;  %v2528_v54 = vld [vmem:[%s3537_s13 + $0x34] ss:$8 sps:$4 sm:$0xff]  }
 0x4a4   :  { %v2526_v59 = vld [vmem:[%s3537_s13 + $0x30] ss:$8 sps:$4 sm:$0xff]   ;;  %v2531_v60 = vld [vmem:[%s3537_s13 + $0x44] ss:$8 sps:$4 sm:$0xff]  }
 0x4a5   :  { %v1128_v2 = vadd.f32 %v1112_v61, %v3233_v5  ;;  %1168 = vrot.lane.b32.xlu0 %v1137_v62, %s2778_s5  ;;  %2439 = vmatpush3.bf16.msra.mxu1 %v2516_v46  ;;  %v2529_v61 = vld [vmem:[%s3537_s13 + $0x40] ss:$8 sps:$4 sm:$0xff]   ;;  %v2534_v62 = vld [vmem:[%s3537_s13 + $0x54] ss:$8 sps:$4 sm:$0xff]  }
 0x4a7   :  { %v1138_v4 = vpack.c.bf16 %v1128_v2, %v1127_v1  ;;  %v2532_v1 = vld [vmem:[%s3537_s13 + $0x50] ss:$8 sps:$4 sm:$0xff]   ;;  %v2121_v2 = vld [vmem:[%s3534_s10] ss:$0 sm:$0xff] }
 0x4a9   :  { %1170 = vrot.lane.b32.xlu1 %v1138_v4, %s2778_s5 }
 0x4ac   :  { %v1078_v6 = vpop.permute.xlu0 %1077 }
 0x4ad   :  { %v1113_v11 = vmul.f32 %v2601_v9, %v1078_v6 }
 0x4ae   :  { %v1080_v12 = vpop.permute.xlu1 %1079 }
 0x4af   :  { %v1114_v14 = vmul.f32 %v2602_v13, %v1080_v12  ;;  %v1129_v16 = vadd.f32 %v1113_v11, %v3250_v26 }
 0x4b0   :  { %v1082_v15 = vpop.permute.xlu0 %1081 }
 0x4b1   :  { %v1130_v17 = vadd.f32 %v1114_v14, %v3259_v58  ;;  %v1115_v19 = vmul.f32 %v2603_v18, %v1082_v15 }
 0x4b2   :  { %v1084_v21 = vpop.permute.xlu1 %1083 }
 0x4b3   :  { %v1116_v25 = vmul.f32 %v2604_v23, %v1084_v21  ;;  %v1139_v30 = vpack.c.bf16 %v1130_v17, %v1129_v16  ;;  %v1131_v31 = vadd.f32 %v1115_v19, %v3247_v20 }
 0x4b5   :  { %v1132_v33 = vadd.f32 %v1116_v25, %v3253_v28  ;;  %1172 = vrot.lane.b32.xlu0 %v1139_v30, %s2778_s5 }
 0x4b7   :  { %v1140_v34 = vpack.c.bf16 %v1132_v33, %v1131_v31 }
 0x4b9   :  { %1174 = vrot.lane.b32.xlu1 %v1140_v34, %s2778_s5 }
 0x4f8   :  { %v1163_v36 = vpop.permute.xlu1 %1162 }
 0x4f9   :  { %v1161_v35 = vpop.permute.xlu0 %1160 }
 0x4fa   :  { %2416 = vmatprep.mubr.msk.bf16.mxu0 %vm194_vm0, %v1161_v35 }
 0x4fb   :  { %2417 = vmatmul.mubr.msk.bf16.vlgmr.msra.gmra.mrb[56].mxu0 %vm194_vm0, %v1163_v36 }
 0x4fc   :  { %1626 = vmatpush1.bf16.msra.mxu0 %v2517_v47 }
 0x4fd   :  { %1627 = vmatprep.subr.bf16.mxu0 %v2522_v56 }
 0x500   :  { %1628 = vmatpush1.bf16.msra.mxu0 %v2520_v57 }
 0x501   :  { %1629 = vmatprep.subr.bf16.mxu0 %v2525_v50 }
 0x504   :  { %1630 = vmatpush1.bf16.msra.mxu0 %v2523_v51 }
 0x505   :  { %1631 = vmatprep.subr.bf16.mxu0 %v2528_v54 }
 0x507   :  { %v1165_v37 = vpop.permute.xlu0 %1164 }
 0x508   :  { %2420 = vmatprep.mubr.msk.bf16.mxu0 %vm194_vm0, %v1165_v37  ;;  %1632 = vmatpush1.bf16.msra.mxu0 %v2526_v59 }
 0x509   :  { %1633 = vmatprep.subr.bf16.mxu0 %v2531_v60 }
 0x50b   :  { %v1167_v38 = vpop.permute.xlu1 %1166 }
 0x50c   :  { %2421 = vmatmul.mubr.msk.bf16.gmra.mrb[60].mxu0 %vm194_vm0, %v1167_v38 }
 0x50d   :  { %1634 = vmatpush1.bf16.msra.mxu0 %v2529_v61 }
 0x50e   :  { %1635 = vmatprep.subr.bf16.mxu0 %v2534_v62 }
 0x511   :  { %1636 = vmatpush1.bf16.msra.mxu0 %v2532_v1 }
 0x517   :  { %v1169_v39 = vpop.permute.xlu0 %1168 }
 0x518   :  { %2424 = vmatprep.mubr.msk.bf16.mxu0 %vm194_vm0, %v1169_v39 }
 0x51b   :  { %v1171_v41 = vpop.permute.xlu1 %1170 }
 0x51c   :  { %2425 = vmatmul.mubr.msk.bf16.gmra.mrb[64].mxu0 %vm194_vm0, %v1171_v41 }
 0x527   :  { %v1173_v42 = vpop.permute.xlu0 %1172 }
 0x528   :  { %2428 = vmatprep.mubr.msk.bf16.mxu0 %vm194_vm0, %v1173_v42 }
 0x52b   :  { %v1175_v44 = vpop.permute.xlu1 %1174 }
 0x52c   :  { %2429 = vmatmul.mubr.msk.bf16.gmra.mrb[68].mxu0 %vm194_vm0, %v1175_v44 }
 0x52d   :  { %1657 = vmatprep.mubr.bf16.mxu0 %v2777_v0 }
 0x5ce   :  { %v2418_v4 = vpop.f32.mrb[56].mxu0 }
 0x5cf   :  { %v1255_v6 = vadd.f32 %v2418_v4, %v2121_v2  ;;  %v1246_v7 = vpop.f32.mrb[57].mxu0 }
 0x5d0   :  { %v1247_v8 = vadd.f32 %v2121_v2, %v1246_v7  ;;  %v2419_v9 = vpop.f32.mrb[58].mxu0 }
 0x5d1   :  { %v1258_v11 = vadd.f32 %v2419_v9, %v2121_v2  ;;  %v1249_v12 = vpop.f32.mrb[59].mxu0  ;;  %v1311_v14 = vmax.f32 %v1255_v6, 0.0 }
 0x5d2   :  { %v1250_v13 = vadd.f32 %v2121_v2, %v1249_v12  ;;  %v1309_v16 = vmax.f32 %v1247_v8, 0.0 }
 0x5d3   :  { %v1312_v15 = vmax.f32 %v1258_v11, 0.0 }
 0x5d4   :  { %v1310_v17 = vmax.f32 %v1250_v13, 0.0 }
 0x5d5   :  { %v1326_v18 = vpack.c.bf16 %v1312_v15, %v1311_v14 }
 0x5d6   :  { %v1325_v19 = vpack.c.bf16 %v1310_v17, %v1309_v16 }
 0x5d8   :  { %2440 = vmatprep.mubr.msk.bf16.mxu1 %vm867_vm1, %v1325_v19  ;;  %v2537_v19 = vld [vmem:[%s3537_s13 + $0x64] ss:$8 sps:$4 sm:$0xff]  }
 0x5d9   :  { %2441 = vmatmul.mubr.msk.bf16.vlgmr.msra.gmra.mrb[40].mxu1 %vm867_vm1, %v1326_v18  ;;  %1637 = vmatprep.subr.bf16.mxu0 %v2537_v19 }
 0x5df   :  { %v2422_v21 = vpop.f32.mrb[60].mxu0 }
 0x5e0   :  { %v1271_v23 = vadd.f32 %v2422_v21, %v2121_v2  ;;  %v1262_v25 = vpop.f32.mrb[61].mxu0  ;;  %v2535_v21 = vld [vmem:[%s3537_s13 + $0x60] ss:$8 sps:$4 sm:$0xff]  }
 0x5e1   :  { %v1263_v30 = vadd.f32 %v2121_v2, %v1262_v25  ;;  %v2423_v31 = vpop.f32.mrb[62].mxu0  ;;  %1638 = vmatpush1.bf16.msra.mxu0 %v2535_v21  ;;  %v2541_v25 = vld [vmem:[#allocation11 + $0x40] sm:$0xff]  }
 0x5e2   :  { %v1274_v33 = vadd.f32 %v2423_v31, %v2121_v2  ;;  %v1265_v34 = vpop.f32.mrb[63].mxu0  ;;  %v1315_v36 = vmax.f32 %v1271_v23, 0.0  ;;  %v2538_v23 = vld [vmem:[%s3537_s13 + $0x70] ss:$8 sps:$4 sm:$0xff]   ;;  %v2543_v31 = vld [vmem:[#allocation11 + $0x48] sm:$0xff]   ;;  %2292 = vmatprep.subr.bf16.mxu1 %v2541_v25 }
 0x5e3   :  { %v1266_v35 = vadd.f32 %v2121_v2, %v1265_v34  ;;  %v1313_v38 = vmax.f32 %v1263_v30, 0.0  ;;  %v2542_v30 = vld [vmem:[#allocation11] sm:$0xff]   ;;  %v2545_v34 = vld [vmem:[#allocation11 + $0x50] sm:$0xff]  }
 0x5e4   :  { %v1316_v37 = vmax.f32 %v1274_v33, 0.0  ;;  %2293 = vmatpush3.bf16.msra.mxu1 %v2542_v30  ;;  %v2544_v33 = vld [vmem:[#allocation11 + $0x8] sm:$0xff]  }
 0x5e5   :  { %v1314_v39 = vmax.f32 %v1266_v35, 0.0  ;;  %2294 = vmatprep.subr.bf16.mxu1 %v2543_v31  ;;  %v2546_v35 = vld [vmem:[#allocation11 + $0x10] sm:$0xff]  }
 0x5e6   :  { %v1328_v41 = vpack.c.bf16 %v1316_v37, %v1315_v36  ;;  %v2547_v36 = vld [vmem:[#allocation11 + $0x58] sm:$0xff]  }
 0x5e7   :  { %v1327_v42 = vpack.c.bf16 %v1314_v39, %v1313_v38  ;;  %v2548_v37 = vld [vmem:[#allocation11 + $0x18] sm:$0xff]   ;;  %v2549_v38 = vld [vmem:[#allocation11 + $0x60] sm:$0xff]  }
 0x5e8   :  { %2295 = vmatpush3.bf16.msra.mxu1 %v2544_v33  ;;  %v2550_v39 = vld [vmem:[#allocation11 + $0x20] sm:$0xff]  }
 0x5e9   :  { %2444 = vmatprep.mubr.msk.bf16.mxu1 %vm867_vm1, %v1327_v42  ;;  %2296 = vmatprep.subr.bf16.mxu1 %v2545_v34  ;;  %v2132_v42 = vld [vmem:[%s3536_s12] ss:$0 sm:$0xff] }
 0x5ea   :  { %2445 = vmatmul.mubr.msk.bf16.gmra.mrb[44].mxu1 %vm867_vm1, %v1328_v41  ;;  %v2551_v41 = vld [vmem:[#allocation11 + $0x68] sm:$0xff]  }
 0x5ec   :  { %2297 = vmatpush3.bf16.msra.mxu1 %v2546_v35 }
 0x5ed   :  { %2298 = vmatprep.subr.bf16.mxu1 %v2547_v36 }
 0x5ef   :  { %v2426_v44 = vpop.f32.mrb[64].mxu0 }
 0x5f0   :  { %v1287_v22 = vadd.f32 %v2426_v44, %v2121_v2  ;;  %v1278_v46 = vpop.f32.mrb[65].mxu0  ;;  %2299 = vmatpush3.bf16.msra.mxu1 %v2548_v37 }
 0x5f1   :  { %v1279_v47 = vadd.f32 %v2121_v2, %v1278_v46  ;;  %v2427_v48 = vpop.f32.mrb[66].mxu0  ;;  %2300 = vmatprep.subr.bf16.mxu1 %v2549_v38 }
 0x5f2   :  { %v1290_v56 = vadd.f32 %v2427_v48, %v2121_v2  ;;  %v1281_v57 = vpop.f32.mrb[67].mxu0  ;;  %v1319_v51 = vmax.f32 %v1287_v22, 0.0 }
 0x5f3   :  { %v1282_v50 = vadd.f32 %v2121_v2, %v1281_v57  ;;  %v1317_v59 = vmax.f32 %v1279_v47, 0.0 }
 0x5f4   :  { %v1320_v54 = vmax.f32 %v1290_v56, 0.0  ;;  %2301 = vmatpush3.bf16.msra.mxu1 %v2550_v39 }
 0x5f5   :  { %v1318_v60 = vmax.f32 %v1282_v50, 0.0  ;;  %2302 = vmatprep.subr.bf16.mxu1 %v2551_v41 }
 0x5f6   :  { %v1330_v61 = vpack.c.bf16 %v1320_v54, %v1319_v51 }
 0x5f7   :  { %v1329_v62 = vpack.c.bf16 %v1318_v60, %v1317_v59 }
 0x5f9   :  { %2448 = vmatprep.mubr.msk.bf16.mxu1 %vm867_vm1, %v1329_v62 }
 0x5fa   :  { %2449 = vmatmul.mubr.msk.bf16.gmra.mrb[48].mxu1 %vm867_vm1, %v1330_v61 }
 0x5ff   :  { %v2430_v1 = vpop.f32.mrb[68].mxu0 }
 0x600   :  { %v1303_v4 = vadd.f32 %v2430_v1, %v2121_v2  ;;  %v1294_v6 = vpop.f32.mrb[69].mxu0 }
 0x601   :  { %v1295_v7 = vadd.f32 %v2121_v2, %v1294_v6  ;;  %v2431_v8 = vpop.f32.mrb[70].mxu0 }
 0x602   :  { %v1306_v9 = vadd.f32 %v2431_v8, %v2121_v2  ;;  %v1297_v11 = vpop.f32.mrb[71].mxu0  ;;  %v1323_v13 = vmax.f32 %v1303_v4, 0.0 }
 0x603   :  { %v1298_v12 = vadd.f32 %v2121_v2, %v1297_v11  ;;  %v1321_v15 = vmax.f32 %v1295_v7, 0.0  ;;  %v2540_v2 = vld [vmem:[%s3537_s13 + $0x74] ss:$8 sps:$4 sm:$0xff]  }
 0x604   :  { %v1324_v14 = vmax.f32 %v1306_v9, 0.0  ;;  %1639 = vmatprep.subr.bf16.mxu0 %v2540_v2 }
 0x605   :  { %v1322_v16 = vmax.f32 %v1298_v12, 0.0  ;;  %1640 = vmatpush1.bf16.msra.mxu0 %v2538_v23 }
 0x606   :  { %v1332_v17 = vpack.c.bf16 %v1324_v14, %v1323_v13 }
 0x607   :  { %v1331_v18 = vpack.c.bf16 %v1322_v16, %v1321_v15 }
 0x609   :  { %2452 = vmatprep.mubr.msk.bf16.mxu1 %vm867_vm1, %v1331_v18 }
 0x60a   :  { %2453 = vmatmul.mubr.msk.bf16.gmra.mrb[52].mxu1 %vm867_vm1, %v1332_v17 }
 0x6ac   :  { %v2442_v44 = vpop.f32.mrb[40].mxu1 }
 0x6ad   :  { %v1439_v22 = vadd.f32 %v2442_v44, %v2132_v42  ;;  %v1430_v46 = vpop.f32.mrb[41].mxu1 }
 0x6ae   :  { %v1431_v47 = vadd.f32 %v2132_v42, %v1430_v46  ;;  %v2443_v48 = vpop.f32.mrb[42].mxu1 }
 0x6af   :  { %v1442_v56 = vadd.f32 %v2443_v48, %v2132_v42  ;;  %v1433_v57 = vpop.f32.mrb[43].mxu1  ;;  %v1495_v51 = vmax.f32 %v1439_v22, 0.0 }
 0x6b0   :  { %v1434_v50 = vadd.f32 %v2132_v42, %v1433_v57  ;;  %v1493_v59 = vmax.f32 %v1431_v47, 0.0 }
 0x6b1   :  { %v1496_v54 = vmax.f32 %v1442_v56, 0.0 }
 0x6b2   :  { %v1494_v60 = vmax.f32 %v1434_v50, 0.0 }
 0x6b3   :  { %v1510_v61 = vpack.c.bf16 %v1496_v54, %v1495_v51 }
 0x6b4   :  { %v1509_v62 = vpack.c.bf16 %v1494_v60, %v1493_v59 }
 0x6b6   :  { %1658 = vmatmul.mubr.bf16.vlgmr.msra.gmra.mrb[72].mxu0 %v1509_v62  ;;  %v2552_v62 = vld [vmem:[#allocation11 + $0x28] sm:$0xff]  }
 0x6b7   :  { %1667 = vmatprep.mubr.bf16.mxu0 %v2777_v0  ;;  %2303 = vmatpush3.bf16.msra.mxu1 %v2552_v62 }
 0x6bd   :  { %v2446_v1 = vpop.f32.mrb[44].mxu1 }
 0x6be   :  { %v1455_v4 = vadd.f32 %v2446_v1, %v2132_v42  ;;  %v1446_v6 = vpop.f32.mrb[45].mxu1  ;;  %1668 = vmatmul.mubr.bf16.gmra.mrb[76].mxu0 %v1510_v61  ;;  %v2553_v1 = vld [vmem:[#allocation11 + $0x70] sm:$0xff]  }
 0x6bf   :  { %v1447_v7 = vadd.f32 %v2132_v42, %v1446_v6  ;;  %v2447_v8 = vpop.f32.mrb[46].mxu1  ;;  %1677 = vmatprep.mubr.bf16.mxu0 %v2777_v0  ;;  %2304 = vmatprep.subr.bf16.mxu1 %v2553_v1  ;;  %v2555_v6 = vld [vmem:[#allocation11 + $0x78] sm:$0xff]  }
 0x6c0   :  { %v1458_v9 = vadd.f32 %v2447_v8, %v2132_v42  ;;  %v1449_v11 = vpop.f32.mrb[47].mxu1  ;;  %v1499_v13 = vmax.f32 %v1455_v4, 0.0  ;;  %v2554_v4 = vld [vmem:[#allocation11 + $0x30] sm:$0xff]  }
 0x6c1   :  { %v1450_v12 = vadd.f32 %v2132_v42, %v1449_v11  ;;  %v1497_v15 = vmax.f32 %v1447_v7, 0.0  ;;  %2305 = vmatpush3.bf16.msra.mxu1 %v2554_v4  ;;  %v2556_v7 = vld [vmem:[#allocation11 + $0x38] sm:$0xff]  }
 0x6c2   :  { %v1500_v14 = vmax.f32 %v1458_v9, 0.0  ;;  %2306 = vmatprep.subr.bf16.mxu1 %v2555_v6 }
 0x6c3   :  { %v1498_v16 = vmax.f32 %v1450_v12, 0.0 }
 0x6c4   :  { %v1512_v17 = vpack.c.bf16 %v1500_v14, %v1499_v13 }
 0x6c5   :  { %v1511_v18 = vpack.c.bf16 %v1498_v16, %v1497_v15  ;;  %2307 = vmatpush3.bf16.msra.mxu1 %v2556_v7 }
 0x6c7   :  { %1678 = vmatmul.mubr.bf16.gmra.mrb[80].mxu0 %v1511_v18 }
 0x6c8   :  { %1687 = vmatprep.mubr.bf16.mxu0 %v2777_v0 }
 0x6cd   :  { %v2450_v19 = vpop.f32.mrb[48].mxu1 }
 0x6ce   :  { %v1471_v21 = vadd.f32 %v2450_v19, %v2132_v42  ;;  %v1462_v2 = vpop.f32.mrb[49].mxu1 }
 0x6cf   :  { %v1463_v23 = vadd.f32 %v2132_v42, %v1462_v2  ;;  %v2451_v25 = vpop.f32.mrb[50].mxu1  ;;  %1688 = vmatmul.mubr.bf16.gmra.mrb[84].mxu0 %v1512_v17 }
 0x6d0   :  { %v1474_v30 = vadd.f32 %v2451_v25, %v2132_v42  ;;  %v1465_v31 = vpop.f32.mrb[51].mxu1  ;;  %1697 = vmatprep.mubr.bf16.mxu0 %v2777_v0  ;;  %v1503_v34 = vmax.f32 %v1471_v21, 0.0 }
 0x6d1   :  { %v1466_v33 = vadd.f32 %v2132_v42, %v1465_v31  ;;  %v1501_v36 = vmax.f32 %v1463_v23, 0.0 }
 0x6d2   :  { %v1504_v35 = vmax.f32 %v1474_v30, 0.0 }
 0x6d3   :  { %v1502_v37 = vmax.f32 %v1466_v33, 0.0 }
 0x6d4   :  { %v1514_v38 = vpack.c.bf16 %v1504_v35, %v1503_v34 }
 0x6d5   :  { %v1513_v39 = vpack.c.bf16 %v1502_v37, %v1501_v36 }
 0x6d7   :  { %1698 = vmatmul.mubr.bf16.gmra.mrb[88].mxu0 %v1513_v39 }
 0x6d8   :  { %1707 = vmatprep.mubr.bf16.mxu0 %v2777_v0 }
 0x6dd   :  { %v2454_v41 = vpop.f32.mrb[52].mxu1 }
 0x6de   :  { %v1487_v44 = vadd.f32 %v2454_v41, %v2132_v42  ;;  %v1478_v22 = vpop.f32.mrb[53].mxu1 }
 0x6df   :  { %v1479_v46 = vadd.f32 %v2132_v42, %v1478_v22  ;;  %v2455_v47 = vpop.f32.mrb[54].mxu1  ;;  %1708 = vmatmul.mubr.bf16.gmra.mrb[92].mxu0 %v1514_v38 }
 0x6e0   :  { %v1490_v48 = vadd.f32 %v2455_v47, %v2132_v42  ;;  %v1481_v56 = vpop.f32.mrb[55].mxu1  ;;  %1717 = vmatprep.mubr.bf16.mxu0 %v2777_v0  ;;  %v1507_v50 = vmax.f32 %v1487_v44, 0.0 }
 0x6e1   :  { %v1482_v57 = vadd.f32 %v2132_v42, %v1481_v56  ;;  %v1505_v54 = vmax.f32 %v1479_v46, 0.0  ;;  %v1533_v42 = vld [vmem:[%s3538_s14] sm:$0x3] }
 0x6e2   :  { %v1508_v51 = vmax.f32 %v1490_v48, 0.0  ;;  %v3437_v8 = vrot.slane %v1533_v42, %v166_v53 }
 0x6e3   :  { %v1506_v59 = vmax.f32 %v1482_v57, 0.0 }
 0x6e4   :  { %v1516_v60 = vpack.c.bf16 %v1508_v51, %v1507_v50 }
 0x6e5   :  { %v1515_v61 = vpack.c.bf16 %v1506_v59, %v1505_v54 }
 0x6e7   :  { %1718 = vmatmul.mubr.bf16.gmra.mrb[96].mxu0 %v1515_v61 }
 0x6e8   :  { %1727 = vmatprep.mubr.bf16.mxu0 %v2777_v0  ;;  %v3441_v0 = vrot.slane %v1533_v42, %v170_v55 }
 0x6ef   :  { %1728 = vmatmul.mubr.bf16.gmra.mrb[100].mxu0 %v1516_v60 }
 0x789   :  { %v1659_v9 = vpop.f32.mrb[72].mxu0 }
 0x78a   :  { %v1660_v11 = vadd.f32 %v1659_v9, %v3437_v8  ;;  %v1661_v12 = vpop.f32.mrb[73].mxu0 }
 0x78b   :  { %v1662_v13 = vadd.f32 %v1661_v12, %v3441_v0  ;;  %v1663_v14 = vpop.f32.mrb[74].mxu0 }
 0x78c   :  { %v1664_v15 = vadd.f32 %v1663_v14, %v3437_v8  ;;  %v1665_v16 = vpop.f32.mrb[75].mxu0  ;;  %v1738_v18 = vmax.f32 %v1660_v11, 0.0 }
 0x78d   :  { %v1666_v17 = vadd.f32 %v1665_v16, %v3441_v0  ;;  %v1739_v53 = vmax.f32 %v1662_v13, 0.0 }
 0x78e   :  { %v1740_v19 = vmax.f32 %v1664_v15, 0.0 }
 0x78f   :  { %v1741_v21 = vmax.f32 %v1666_v17, 0.0 }
 0x790   :  { %v1770_v2 = vpack.c.bf16 %v1740_v19, %v1738_v18 }
 0x791   :  { %v1771_v52 = vpack.c.bf16 %v1741_v21, %v1739_v53  ;;  %v1669_v55 = vpop.f32.mrb[76].mxu0 }
 0x792   :  { %v1670_v23 = vadd.f32 %v1669_v55, %v3437_v8  ;;  %v1671_v25 = vpop.f32.mrb[77].mxu0 }
 0x793   :  { %v1672_v30 = vadd.f32 %v1671_v25, %v3441_v0  ;;  %v1673_v31 = vpop.f32.mrb[78].mxu0  ;;  %1953 = vmatprep.mubr.bf16.mxu1 %v1771_v52 }
 0x794   :  { %v1674_v33 = vadd.f32 %v1673_v31, %v3437_v8  ;;  %v1675_v34 = vpop.f32.mrb[79].mxu0  ;;  %1954 = vmatmul.mubr.bf16.vlgmr.msra.gmra.mrb[56].mxu1 %v1770_v2  ;;  %v1742_v36 = vmax.f32 %v1670_v23, 0.0 }
 0x795   :  { %v1676_v35 = vadd.f32 %v1675_v34, %v3441_v0  ;;  %v1743_v38 = vmax.f32 %v1672_v30, 0.0 }
 0x796   :  { %v1744_v37 = vmax.f32 %v1674_v33, 0.0 }
 0x797   :  { %v1745_v39 = vmax.f32 %v1676_v35, 0.0 }
 0x798   :  { %v1772_v41 = vpack.c.bf16 %v1744_v37, %v1742_v36 }
 0x799   :  { %v1773_v44 = vpack.c.bf16 %v1745_v39, %v1743_v38 }
 0x79a   :  { %v1679_v22 = vpop.f32.mrb[80].mxu0 }
 0x79b   :  { %v1680_v46 = vadd.f32 %v1679_v22, %v3437_v8  ;;  %v1681_v47 = vpop.f32.mrb[81].mxu0  ;;  %1961 = vmatprep.mubr.bf16.mxu1 %v1773_v44 }
 0x79c   :  { %v1682_v48 = vadd.f32 %v1681_v47, %v3441_v0  ;;  %v1683_v56 = vpop.f32.mrb[82].mxu0  ;;  %1962 = vmatmul.mubr.bf16.gmra.mrb[60].mxu1 %v1772_v41 }
 0x79d   :  { %v1684_v57 = vadd.f32 %v1683_v56, %v3437_v8  ;;  %v1685_v50 = vpop.f32.mrb[83].mxu0  ;;  %v1746_v54 = vmax.f32 %v1680_v46, 0.0 }
 0x79e   :  { %v1686_v51 = vadd.f32 %v1685_v50, %v3441_v0  ;;  %v1747_v60 = vmax.f32 %v1682_v48, 0.0 }
 0x79f   :  { %v1748_v59 = vmax.f32 %v1684_v57, 0.0 }
 0x7a0   :  { %v1749_v61 = vmax.f32 %v1686_v51, 0.0 }
 0x7a1   :  { %v1774_v62 = vpack.c.bf16 %v1748_v59, %v1746_v54 }
 0x7a2   :  { %v1775_v1 = vpack.c.bf16 %v1749_v61, %v1747_v60  ;;  %v1689_v4 = vpop.f32.mrb[84].mxu0 }
 0x7a3   :  { %v1690_v6 = vadd.f32 %v1689_v4, %v3437_v8  ;;  %v1691_v7 = vpop.f32.mrb[85].mxu0 }
 0x7a4   :  { %v1692_v42 = vadd.f32 %v1691_v7, %v3441_v0  ;;  %v1693_v9 = vpop.f32.mrb[86].mxu0  ;;  %1969 = vmatprep.mubr.bf16.mxu1 %v1775_v1 }
 0x7a5   :  { %v1694_v11 = vadd.f32 %v1693_v9, %v3437_v8  ;;  %v1695_v12 = vpop.f32.mrb[87].mxu0  ;;  %1970 = vmatmul.mubr.bf16.gmra.mrb[64].mxu1 %v1774_v62  ;;  %v1750_v14 = vmax.f32 %v1690_v6, 0.0 }
 0x7a6   :  { %v1696_v13 = vadd.f32 %v1695_v12, %v3441_v0  ;;  %v1751_v16 = vmax.f32 %v1692_v42, 0.0 }
 0x7a7   :  { %v1752_v15 = vmax.f32 %v1694_v11, 0.0 }
 0x7a8   :  { %v1753_v17 = vmax.f32 %v1696_v13, 0.0 }
 0x7a9   :  { %v1776_v18 = vpack.c.bf16 %v1752_v15, %v1750_v14 }
 0x7aa   :  { %v1777_v19 = vpack.c.bf16 %v1753_v17, %v1751_v16  ;;  %v1699_v53 = vpop.f32.mrb[88].mxu0 }
 0x7ab   :  { %v1700_v21 = vadd.f32 %v1699_v53, %v3437_v8  ;;  %v1701_v2 = vpop.f32.mrb[89].mxu0 }
 0x7ac   :  { %v1702_v52 = vadd.f32 %v1701_v2, %v3441_v0  ;;  %v1703_v55 = vpop.f32.mrb[90].mxu0  ;;  %1977 = vmatprep.mubr.bf16.mxu1 %v1777_v19 }
 0x7ad   :  { %v1704_v23 = vadd.f32 %v1703_v55, %v3437_v8  ;;  %v1705_v25 = vpop.f32.mrb[91].mxu0  ;;  %1978 = vmatmul.mubr.bf16.gmra.mrb[68].mxu1 %v1776_v18  ;;  %v1754_v31 = vmax.f32 %v1700_v21, 0.0 }
 0x7ae   :  { %v1706_v30 = vadd.f32 %v1705_v25, %v3441_v0  ;;  %v1755_v34 = vmax.f32 %v1702_v52, 0.0 }
 0x7af   :  { %v1756_v33 = vmax.f32 %v1704_v23, 0.0 }
 0x7b0   :  { %v1757_v35 = vmax.f32 %v1706_v30, 0.0 }
 0x7b1   :  { %v1778_v36 = vpack.c.bf16 %v1756_v33, %v1754_v31 }
 0x7b2   :  { %v1779_v37 = vpack.c.bf16 %v1757_v35, %v1755_v34  ;;  %v1709_v38 = vpop.f32.mrb[92].mxu0  ;;  %v3478_v35 = vld [vmem:[%s3540_s16] ss:$0 sm:$0xff]  ;;  %s2779_s16 = smov [#allocation13]  }
 0x7b3   :  { %v1710_v39 = vadd.f32 %v1709_v38, %v3437_v8  ;;  %v1711_v41 = vpop.f32.mrb[93].mxu0  ;;  %s2055_s18 = sshll.u32 %s2779_s16, 4  ;;  %s2056_s18 = int_to_ptr.vmem [resolvable:$true] %s2055_s18 }
 0x7b4   :  { %v1712_v44 = vadd.f32 %v1711_v41, %v3441_v0  ;;  %v1713_v22 = vpop.f32.mrb[94].mxu0  ;;  %1985 = vmatprep.mubr.bf16.mxu1 %v1779_v37  ;;  %s2737_s27 = scalar_lea.vmem %s2056_s18, 2048  ;;  %p2742_p7 = scmp.lt.s32.totalorder %s2056_s18, %s2056_s18 }
 0x7b5   :  { %v1714_v46 = vadd.f32 %v1713_v22, %v3437_v8  ;;  %v1715_v47 = vpop.f32.mrb[95].mxu0  ;;  %1986 = vmatmul.mubr.bf16.gmra.mrb[72].mxu1 %v1778_v36  ;;  %v1758_v56 = vmax.f32 %v1710_v39, 0.0  ;;  %p2738_p6 = scmp.ne.s32.totalorder %s2056_s18, %s2737_s27  ;;  %p2743_p8 = scmp.lt.s32.totalorder %s2737_s27, %s2737_s27 }
 0x7b6   :  { %v1716_v48 = vadd.f32 %v1715_v47, %v3441_v0  ;;  %v1759_v50 = vmax.f32 %v1712_v44, 0.0 }
 0x7b7   :  { %v1760_v57 = vmax.f32 %v1714_v46, 0.0  ;;  %p2744_p9 = por %p2743_p8, %p2742_p7 }
 0x7b8   :  { %v1761_v51 = vmax.f32 %v1716_v48, 0.0 }
 0x7b9   :  { %v1780_v54 = vpack.c.bf16 %v1760_v57, %v1758_v56  ;;  %p2745_p10 = pnand %p2744_p9, %p2738_p6 }
 0x7ba   :  { %v1781_v59 = vpack.c.bf16 %v1761_v51, %v1759_v50  ;;  %v1719_v60 = vpop.f32.mrb[96].mxu0 }
 0x7bb   :  { %v1720_v61 = vadd.f32 %v1719_v60, %v3437_v8  ;;  %v1721_v62 = vpop.f32.mrb[97].mxu0 }
 0x7bc   :  { %v1722_v1 = vadd.f32 %v1721_v62, %v3441_v0  ;;  %v1723_v4 = vpop.f32.mrb[98].mxu0  ;;  %1993 = vmatprep.mubr.bf16.mxu1 %v1781_v59 }
 0x7bd   :  { %v1724_v6 = vadd.f32 %v1723_v4, %v3437_v8  ;;  %v1725_v7 = vpop.f32.mrb[99].mxu0  ;;  %1994 = vmatmul.mubr.bf16.gmra.mrb[76].mxu1 %v1780_v54  ;;  %v1762_v9 = vmax.f32 %v1720_v61, 0.0 }
 0x7be   :  { %v1726_v42 = vadd.f32 %v1725_v7, %v3441_v0  ;;  %v1763_v12 = vmax.f32 %v1722_v1, 0.0 }
 0x7bf   :  { %v1764_v11 = vmax.f32 %v1724_v6, 0.0 }
 0x7c0   :  { %v1765_v13 = vmax.f32 %v1726_v42, 0.0 }
 0x7c1   :  { %v1782_v14 = vpack.c.bf16 %v1764_v11, %v1762_v9 }
 0x7c2   :  { %v1783_v15 = vpack.c.bf16 %v1765_v13, %v1763_v12  ;;  %v1729_v16 = vpop.f32.mrb[100].mxu0 }
 0x7c3   :  { %v1730_v17 = vadd.f32 %v1729_v16, %v3437_v8  ;;  %v1731_v18 = vpop.f32.mrb[101].mxu0 }
 0x7c4   :  { %v1732_v19 = vadd.f32 %v1731_v18, %v3441_v0  ;;  %v1733_v53 = vpop.f32.mrb[102].mxu0  ;;  %2001 = vmatprep.mubr.bf16.mxu1 %v1783_v15 }
 0x7c5   :  { %v1734_v21 = vadd.f32 %v1733_v53, %v3437_v8  ;;  %v1735_v2 = vpop.f32.mrb[103].mxu0  ;;  %2002 = vmatmul.mubr.bf16.gmra.mrb[80].mxu1 %v1782_v14  ;;  %v1766_v55 = vmax.f32 %v1730_v17, 0.0 }
 0x7c6   :  { %v1736_v52 = vadd.f32 %v1735_v2, %v3441_v0  ;;  %v1767_v25 = vmax.f32 %v1732_v19, 0.0 }
 0x7c7   :  { %v1768_v23 = vmax.f32 %v1734_v21, 0.0 }
 0x7c8   :  { %v1769_v30 = vmax.f32 %v1736_v52, 0.0 }
 0x7c9   :  { %v1784_v31 = vpack.c.bf16 %v1768_v23, %v1766_v55 }
 0x7ca   :  { %v1785_v33 = vpack.c.bf16 %v1769_v30, %v1767_v25 }
 0x7cc   :  { %2009 = vmatprep.mubr.bf16.mxu1 %v1785_v33 }
 0x7cd   :  { %2010 = vmatmul.mubr.bf16.gmra.mrb[84].mxu1 %v1784_v31 }
 0x867   :  { %v2308_v34 = vpop.f32.mrb[56].mxu1 }
 0x868   :  { %v2309_v36 = vpop.f32.mrb[57].mxu1 }
 0x869   :  { %v2310_v8 = vadd.f32 %v2309_v36, %v2308_v34  ;;  %v2311_v37 = vpop.f32.mrb[58].mxu1 }
 0x86a   :  { %v2312_v38 = vpop.f32.mrb[59].mxu1 }
 0x86b   :  { %v1956_v0 = vadd.f32 %v2310_v8, %v3478_v35  ;;  %v2313_v39 = vadd.f32 %v2312_v38, %v2311_v37 }
 0x86d   :  { %v2018_v41 = vadd.f32 %v1956_v0, %v3194_v27  ;;  %v1959_v44 = vadd.f32 %v2313_v39, %v3478_v35 }
 0x86f   :  { %2034 = vst [vmem:[#allocation13] sm:$0xff] %v2018_v41  ;;  %v2019_v22 = vadd.f32 %v1959_v44, %v3202_v32  ;;  %v2314_v46 = vpop.f32.mrb[60].mxu1 }
 0x870   :  { %v2315_v47 = vpop.f32.mrb[61].mxu1 }
 0x871   :  { %2035 = vst [vmem:[#allocation13 + $0x8] sm:$0xff] %v2019_v22  ;;  %v2316_v48 = vadd.f32 %v2315_v47, %v2314_v46  ;;  %v2317_v56 = vpop.f32.mrb[62].mxu1 }
 0x872   :  { %v2318_v57 = vpop.f32.mrb[63].mxu1 }
 0x873   :  { %v1964_v50 = vadd.f32 %v2316_v48, %v3478_v35  ;;  %v2319_v51 = vadd.f32 %v2318_v57, %v2317_v56 }
 0x875   :  { %v2020_v54 = vadd.f32 %v1964_v50, %v3191_v24  ;;  %v1967_v59 = vadd.f32 %v2319_v51, %v3478_v35 }
 0x877   :  { %2036 = vst [vmem:[#allocation13 + $0x10] sm:$0xff] %v2020_v54  ;;  %v2021_v27 = vadd.f32 %v1967_v59, %v3198_v29 }
 0x878   :  { %v2320_v60 = vpop.f32.mrb[64].mxu1 }
 0x879   :  { %2037 = vst [vmem:[#allocation13 + $0x18] sm:$0xff] %v2021_v27  ;;  %v2321_v61 = vpop.f32.mrb[65].mxu1 }
 0x87a   :  { %v2322_v32 = vadd.f32 %v2321_v61, %v2320_v60  ;;  %v2323_v62 = vpop.f32.mrb[66].mxu1 }
 0x87b   :  { %v2324_v1 = vpop.f32.mrb[67].mxu1 }
 0x87c   :  { %v1972_v4 = vadd.f32 %v2322_v32, %v3478_v35  ;;  %v2325_v6 = vadd.f32 %v2324_v1, %v2323_v62 }
 0x87e   :  { %v2022_v7 = vadd.f32 %v1972_v4, %v3210_v43  ;;  %v1975_v42 = vadd.f32 %v2325_v6, %v3478_v35 }
 0x880   :  { %2038 = vst [vmem:[#allocation13 + $0x20] sm:$0xff] %v2022_v7  ;;  %v2023_v24 = vadd.f32 %v1975_v42, %v3220_v49  ;;  %v2326_v9 = vpop.f32.mrb[68].mxu1 }
 0x881   :  { %v2327_v11 = vpop.f32.mrb[69].mxu1 }
 0x882   :  { %2039 = vst [vmem:[#allocation13 + $0x28] sm:$0xff] %v2023_v24  ;;  %v2328_v29 = vadd.f32 %v2327_v11, %v2326_v9  ;;  %v2329_v12 = vpop.f32.mrb[70].mxu1 }
 0x883   :  { %v2330_v13 = vpop.f32.mrb[71].mxu1 }
 0x884   :  { %v1980_v14 = vadd.f32 %v2328_v29, %v3478_v35  ;;  %v2331_v15 = vadd.f32 %v2330_v13, %v2329_v12 }
 0x886   :  { %v2024_v16 = vadd.f32 %v1980_v14, %v3207_v40  ;;  %v1983_v17 = vadd.f32 %v2331_v15, %v3478_v35 }
 0x888   :  { %2040 = vst [vmem:[#allocation13 + $0x30] sm:$0xff] %v2024_v16  ;;  %v2025_v43 = vadd.f32 %v1983_v17, %v3214_v45  ;;  %v2332_v18 = vpop.f32.mrb[72].mxu1 }
 0x889   :  { %v2333_v19 = vpop.f32.mrb[73].mxu1 }
 0x88a   :  { %2041 = vst [vmem:[#allocation13 + $0x38] sm:$0xff] %v2025_v43  ;;  %v2334_v49 = vadd.f32 %v2333_v19, %v2332_v18  ;;  %v2335_v53 = vpop.f32.mrb[74].mxu1 }
 0x88b   :  { %v2336_v21 = vpop.f32.mrb[75].mxu1 }
 0x88c   :  { %v1988_v2 = vadd.f32 %v2334_v49, %v3478_v35  ;;  %v2337_v52 = vadd.f32 %v2336_v21, %v2335_v53 }
 0x88e   :  { %v2026_v55 = vadd.f32 %v1988_v2, %v3230_v3  ;;  %v1991_v23 = vadd.f32 %v2337_v52, %v3478_v35 }
 0x890   :  { %2042 = vst [vmem:[#allocation13 + $0x40] sm:$0xff] %v2026_v55  ;;  %v2027_v40 = vadd.f32 %v1991_v23, %v3239_v10  ;;  %v2338_v25 = vpop.f32.mrb[76].mxu1 }
 0x891   :  { %v2339_v30 = vpop.f32.mrb[77].mxu1 }
 0x892   :  { %2043 = vst [vmem:[#allocation13 + $0x48] sm:$0xff] %v2027_v40  ;;  %v2340_v45 = vadd.f32 %v2339_v30, %v2338_v25  ;;  %v2341_v31 = vpop.f32.mrb[78].mxu1 }
 0x893   :  { %v2342_v33 = vpop.f32.mrb[79].mxu1 }
 0x894   :  { %v1996_v34 = vadd.f32 %v2340_v45, %v3478_v35  ;;  %v2343_v36 = vadd.f32 %v2342_v33, %v2341_v31 }
 0x896   :  { %v2028_v8 = vadd.f32 %v1996_v34, %v3227_v63  ;;  %v1999_v37 = vadd.f32 %v2343_v36, %v3478_v35 }
 0x898   :  { %2044 = vst [vmem:[#allocation13 + $0x50] sm:$0xff] %v2028_v8  ;;  %v2029_v3 = vadd.f32 %v1999_v37, %v3233_v5  ;;  %v2344_v38 = vpop.f32.mrb[80].mxu1 }
 0x899   :  { %v2345_v0 = vpop.f32.mrb[81].mxu1 }
 0x89a   :  { %2045 = vst [vmem:[#allocation13 + $0x58] sm:$0xff] %v2029_v3  ;;  %v2346_v10 = vadd.f32 %v2345_v0, %v2344_v38  ;;  %v2347_v39 = vpop.f32.mrb[82].mxu1 }
 0x89b   :  { %v2348_v41 = vpop.f32.mrb[83].mxu1 }
 0x89c   :  { %v2004_v44 = vadd.f32 %v2346_v10, %v3478_v35  ;;  %v2349_v22 = vadd.f32 %v2348_v41, %v2347_v39 }
 0x89e   :  { %v2030_v46 = vadd.f32 %v2004_v44, %v3250_v26  ;;  %v2007_v47 = vadd.f32 %v2349_v22, %v3478_v35 }
 0x8a0   :  { %2046 = vst [vmem:[#allocation13 + $0x60] sm:$0xff] %v2030_v46  ;;  %v2031_v63 = vadd.f32 %v2007_v47, %v3259_v58  ;;  %v2350_v48 = vpop.f32.mrb[84].mxu1 }
 0x8a1   :  { %v2351_v56 = vpop.f32.mrb[85].mxu1 }
 0x8a2   :  { %2047 = vst [vmem:[#allocation13 + $0x68] sm:$0xff] %v2031_v63  ;;  %v2352_v5 = vadd.f32 %v2351_v56, %v2350_v48  ;;  %v2353_v57 = vpop.f32.mrb[86].mxu1 }
 0x8a3   :  { %v2354_v50 = vpop.f32.mrb[87].mxu1 }
 0x8a4   :  { %v2012_v51 = vadd.f32 %v2352_v5, %v3478_v35  ;;  %v2355_v54 = vadd.f32 %v2354_v50, %v2353_v57 }
 0x8a6   :  { %v2032_v59 = vadd.f32 %v2012_v51, %v3247_v20  ;;  %v2015_v26 = vadd.f32 %v2355_v54, %v3478_v35 }
 0x8a8   :  { %2048 = vst [vmem:[#allocation13 + $0x70] sm:$0xff] %v2032_v59  ;;  %v2033_v27 = vadd.f32 %v2015_v26, %v3253_v28 }
 0x8aa   :  { %2049 = vst [vmem:[#allocation13 + $0x78] sm:$0xff] %v2033_v27 }
 0x8ab   :  { %2748 = shalt.err (!%p2745_p10)
}
 0x8ac   :  { %s2749_s25 = scalar_lea.hbm %s3541_s17, 2048 }
 0x8ad   :  { %p2750_p11 = scmp.ne.s32.totalorder %s3541_s17, %s2749_s25  ;;  %p2753_p12 = scmp.lt.u32.totalorder %s2749_s25, %s3541_s17 }
 0x8af   :  { %p2755_p13 = pnand %p2753_p12, %p2750_p11 }
 0x8b1   :  { %2758 = shalt.err (!%p2755_p13)
}
 0x8b2   :  { %s2780_s22 = smov 128   ;;  %s2781_s29 = smov 8  }
 0x8b3   :  { %2061 = dma.vmem_to_hbm [thread:$0]  %s2056_s18, 2048, %s3541_s17, [#allocation4], %s2780_s22, %s2780_s22, %s2781_s29  }
 0x8b4   :  { %2767 = dma.done.wait [#allocation4], 2048  }
 0x8b5   :  { %2768 = vsyncadd [#allocation4], 4294965248 }
 0x8b6   :  { %2065 = vsyncpa [#allocation3], 1 }
 0x8b7   :  { %2066 = vsyncpa [#allocation6], 1 }
 0x8b8   :  { %2067 = vsyncpa [#allocation9], 1 }
 0x8b9   :  { %2068 = vsyncpa [#allocation12], 1 }
 0x8ba   :  { %2069 = vsyncpa [#allocation4], 1 }

</bundles_post_ra>
